<compile_context>
chip_gen: v7x
topology: tpu7x:2x2x1
jax: 0.10.0
libtpu: 0.0.40
codegen_flags: <defaults>
</compile_context>

<pallas_src>
import functools

import jax
import jax.numpy as jnp
from jax.experimental import pallas as pl
from jax.experimental.pallas import tpu as pltpu


def _attention_kernel(x_ref, wqkv_ref, bqkv_ref, wproj_ref, bproj_ref, o_ref,
                      *, num_heads, head_dim, block_b, scale):
    """One (block_b, N, C) batch block: qkv proj -> MHSA -> output proj."""
    H, D = num_heads, head_dim
    C = H * D
    Bt = block_b
    N = x_ref.shape[1]
    dt = x_ref.dtype

    # 1) Batch-blocked fused qkv projection: one wide MXU matmul over Bt*N rows.
    x2 = x_ref[...].reshape(Bt * N, C)
    qkv = jnp.dot(x2, wqkv_ref[...], preferred_element_type=jnp.float32)
    qkv = qkv + bqkv_ref[...].astype(jnp.float32)               # (Bt*N, 3C) f32

    # 2) Head split as register-level views stacked to (H, Bt*N, D): no scratch
    #    round-trip, no masked sub-128-lane stores.  Softmax scale applied to q
    #    in f32 here rather than being folded into (possibly bf16) weights.
    def split_heads(slab):                                       # (Bt*N, C) -> (H, Bt*N, D)
        return jnp.stack([slab[:, h * D:(h + 1) * D] for h in range(H)], axis=0)

    q_all = split_heads(qkv[:, 0 * C:1 * C] * scale).astype(dt)
    k_all = split_heads(qkv[:, 1 * C:2 * C]).astype(dt)
    v_all = split_heads(qkv[:, 2 * C:3 * C]).astype(dt)

    # 3) Per batch element: head-batched attention, softmax fully in f32.
    ctx_rows = []
    for b in range(Bt):
        rows = slice(b * N, (b + 1) * N)
        q = q_all[:, rows, :]                                    # (H, N, D)
        k = k_all[:, rows, :]
        v = v_all[:, rows, :]

        s = jnp.einsum('hqd,hkd->hqk', q, k,
                       preferred_element_type=jnp.float32)      # (H, N, N) f32
        s = s - jnp.max(s, axis=-1, keepdims=True)
        p = jnp.exp(s)
        l = jnp.sum(p, axis=-1, keepdims=True)                  # (H, N, 1), >= 1

        ctx = jnp.einsum('hqk,hkd->hqd', p.astype(dt), v,
                         preferred_element_type=jnp.float32)    # (H, N, D) f32
        ctx = ctx * pl.reciprocal(l)                            # exact reciprocal

        # Re-pack heads along lanes -> (N, C); the head reduction then happens
        # inside the single output-projection MXU contraction below.
        ctx_rows.append(jnp.concatenate([ctx[h] for h in range(H)], axis=-1))

    ctx_all = ctx_rows[0] if Bt == 1 else jnp.concatenate(ctx_rows, axis=0)  # (Bt*N, C)

    # 4) Batch-blocked fused output projection: one (Bt*N, C) @ (C, C) MXU matmul.
    out = jnp.dot(ctx_all.astype(wproj_ref.dtype), wproj_ref[...],
                  preferred_element_type=jnp.float32)
    out = out + bproj_ref[...].astype(jnp.float32)               # (Bt*N, C) f32

    # 5) Single full-block store.
    o_ref[...] = out.reshape(Bt, N, C).astype(o_ref.dtype)


def _pick_block_b(batch, seq_len, target_rows=256, max_rows=1024):
    """Largest divisor of `batch` with block_b*seq_len <= max_rows, stopping once
    block_b*seq_len reaches target_rows (MXU row fill vs VMEM trade-off).
    On v5e a smaller target (128) already saturates the 128-row MXU."""
    best = 1
    for cand in range(1, batch + 1):
        if batch % cand != 0:
            continue
        if cand * seq_len > max_rows:
            break
        best = cand
        if cand * seq_len >= target_rows:
            break
    return best


def attention_pallas(x, wqkv, bqkv, wproj, bproj, *, num_heads,
                     block_b=None, vmem_limit_bytes=None):
    """UniFormer Attention forward.

    x: (B, N, C); wqkv: (C, 3C) (in, out); bqkv: (3C,); wproj: (C, C); bproj: (C,).
    """
    B, N, C = x.shape
    assert C % num_heads == 0
    head_dim = C // num_heads
    scale = float(head_dim) ** -0.5

    if block_b is None:
        block_b = _pick_block_b(B, N)
    assert B % block_b == 0, (B, block_b)

    bqkv_r = bqkv.reshape(1, 3 * C)
    bproj_r = bproj.reshape(1, C)

    kernel = functools.partial(
        _attention_kernel, num_heads=num_heads, head_dim=head_dim,
        block_b=block_b, scale=scale)

    # Weights/biases use constant index_maps -> DMA'd once and VMEM-resident.
    # (pl.Buffered(1) single-buffering of these specs is a further VMEM lever at
    #  large C; kept at default double-buffering here.)
    return pl.pallas_call(
        kernel,
        out_shape=jax.ShapeDtypeStruct((B, N, C), x.dtype),
        grid_spec=pltpu.PrefetchScalarGridSpec(
            num_scalar_prefetch=0,
            grid=(B // block_b,),
            in_specs=[
                pl.BlockSpec((block_b, N, C), lambda i: (i, 0, 0)),   # x (batch block)
                pl.BlockSpec((C, 3 * C), lambda i: (0, 0)),           # qkv weight (resident)
                pl.BlockSpec((1, 3 * C), lambda i: (0, 0)),           # qkv bias
                pl.BlockSpec((C, C), lambda i: (0, 0)),               # proj weight (resident)
                pl.BlockSpec((1, C), lambda i: (0, 0)),               # proj bias
            ],
            out_specs=pl.BlockSpec((block_b, N, C), lambda i: (i, 0, 0)),
        ),
        compiler_params=pltpu.CompilerParams(
            dimension_semantics=("parallel",),
            vmem_limit_bytes=vmem_limit_bytes),
    )(x, wqkv, bqkv_r, wproj, bproj_r)


def attention_reference(x, wqkv, bqkv, wproj, bproj, *, num_heads):
    """Pure-JAX reference mirroring the PyTorch forward."""
    B, N, C = x.shape
    head_dim = C // num_heads
    scale = float(head_dim) ** -0.5
    qkv = x @ wqkv + bqkv                                    # (B, N, 3C)
    qkv = qkv.reshape(B, N, 3, num_heads, head_dim)
    qkv = jnp.transpose(qkv, (2, 0, 3, 1, 4))                # (3, B, H, N, D)
    q, k, v = qkv[0], qkv[1], qkv[2]
    attn = jnp.einsum('bhnd,bhmd->bhnm', q, k) * scale
    attn = jax.nn.softmax(attn, axis=-1)
    out = jnp.einsum('bhnm,bhmd->bhnd', attn, v)             # (B, H, N, D)
    out = jnp.transpose(out, (0, 2, 1, 3)).reshape(B, N, C)
    return out @ wproj + bproj


if __name__ == "__main__":
    # Small shapes implied by the module: (B, N, C) with C divisible by num_heads.
    B, N, C = 2, 16, 64
    NUM_HEADS = 8

    key = jax.random.PRNGKey(0)
    kx, kw1, kb1, kw2, kb2 = jax.random.split(key, 5)

    x = jax.random.normal(kx, (B, N, C), dtype=jnp.float32)

    # nn.Linear weights are stored transposed here -- (in, out) -- so the kernel
    # computes x @ W directly (same math as PyTorch's x @ W.T with its layout).
    wqkv = jax.random.normal(kw1, (C, 3 * C), dtype=jnp.float32) * 0.05
    bqkv = jax.random.normal(kb1, (3 * C,), dtype=jnp.float32) * 0.05
    wproj = jax.random.normal(kw2, (C, C), dtype=jnp.float32) * 0.05
    bproj = jax.random.normal(kb2, (C,), dtype=jnp.float32) * 0.05

    ref = attention_reference(x, wqkv, bqkv, wproj, bproj, num_heads=NUM_HEADS)

    # float32 operands (all in-kernel math is f32; exact reciprocal).
    out = attention_pallas(x, wqkv, bqkv, wproj, bproj, num_heads=NUM_HEADS)
    out = jax.block_until_ready(out)
    assert out.shape == (B, N, C)
    assert jnp.allclose(out, ref, atol=2e-3, rtol=2e-3), \
        f"max abs diff {jnp.max(jnp.abs(out - ref))}"

    # bfloat16 operands (MXU issue in bf16; accumulation + softmax stay f32).
    out_bf16 = attention_pallas(
        x.astype(jnp.bfloat16), wqkv.astype(jnp.bfloat16), bqkv.astype(jnp.bfloat16),
        wproj.astype(jnp.bfloat16), bproj.astype(jnp.bfloat16), num_heads=NUM_HEADS)
    out_bf16 = jax.block_until_ready(out_bf16)
    assert out_bf16.dtype == jnp.bfloat16
    assert jnp.allclose(out_bf16.astype(jnp.float32), ref, atol=5e-2, rtol=5e-2), \
        f"bf16 max abs diff {jnp.max(jnp.abs(out_bf16.astype(jnp.float32) - ref))}"

    print("KERNEL_OK")
</pallas_src>

<mosaic_0001>
module attributes {stable_mosaic.version = 11 : i64} {
  func.func @_attention_kernel(%arg0: i32, %arg1: memref<2x16x64xf32, #tpu.memory_space<vmem>>, %arg2: memref<64x192xf32, #tpu.memory_space<vmem>>, %arg3: memref<1x192xf32, #tpu.memory_space<vmem>>, %arg4: memref<64x64xf32, #tpu.memory_space<vmem>>, %arg5: memref<1x64xf32, #tpu.memory_space<vmem>>, %arg6: memref<2x16x64xf32, #tpu.memory_space<vmem>>) attributes {dimension_semantics = [#tpu.dimension_semantics<parallel>], iteration_bounds = array<i64: 1>, scalar_prefetch = 0 : i64, scratch_operands = 0 : i64, tpu.core_type = #tpu.core_type<tc>, window_params = [{transform_indices = @transform_0, window_bounds = array<i64: 2, 16, 64>}, {pipeline_mode = #tpu.pipeline_mode<synchronous>, transform_indices = @transform_1, window_bounds = array<i64: 64, 192>}, {pipeline_mode = #tpu.pipeline_mode<synchronous>, transform_indices = @transform_2, window_bounds = array<i64: 1, 192>}, {pipeline_mode = #tpu.pipeline_mode<synchronous>, transform_indices = @transform_3, window_bounds = array<i64: 64, 64>}, {pipeline_mode = #tpu.pipeline_mode<synchronous>, transform_indices = @transform_4, window_bounds = array<i64: 1, 64>}, {transform_indices = @transform_5, window_bounds = array<i64: 2, 16, 64>}]} {
    %c0 = arith.constant 0 : index
    %c0_0 = arith.constant 0 : index
    %c0_1 = arith.constant 0 : index
    %0 = vector.load %arg1[%c0, %c0_0, %c0_1] : memref<2x16x64xf32, #tpu.memory_space<vmem>>, vector<2x16x64xf32>
    %1 = vector.shape_cast %0 : vector<2x16x64xf32> to vector<32x64xf32>
    %c0_2 = arith.constant 0 : index
    %c0_3 = arith.constant 0 : index
    %2 = vector.load %arg2[%c0_2, %c0_3] : memref<64x192xf32, #tpu.memory_space<vmem>>, vector<64x192xf32>
    %cst = arith.constant dense<0.000000e+00> : vector<32x192xf32>
    %3 = tpu.matmul %1, %2, %cst {dimension_numbers = #tpu.dot_dimension_numbers<[1], [0], [0], [1], [0, 0, 1, 1], [], []>} : vector<32x64xf32>, vector<64x192xf32>, vector<32x192xf32> -> vector<32x192xf32>
    %c0_4 = arith.constant 0 : index
    %c0_5 = arith.constant 0 : index
    %4 = vector.load %arg3[%c0_4, %c0_5] : memref<1x192xf32, #tpu.memory_space<vmem>>, vector<1x192xf32>
    %5 = vector.broadcast %4 : vector<1x192xf32> to vector<32x192xf32>
    %6 = arith.addf %3, %5 : vector<32x192xf32>
    %7 = vector.extract_strided_slice %6 {offsets = [0, 0], sizes = [32, 64], strides = [1, 1]} : vector<32x192xf32> to vector<32x64xf32>
    %cst_6 = arith.constant 0.353553385 : f32
    %8 = vector.broadcast %cst_6 : f32 to vector<32x64xf32>
    %9 = arith.mulf %7, %8 : vector<32x64xf32>
    %10 = vector.extract_strided_slice %9 {offsets = [0, 0], sizes = [32, 8], strides = [1, 1]} : vector<32x64xf32> to vector<32x8xf32>
    %11 = vector.extract_strided_slice %9 {offsets = [0, 8], sizes = [32, 8], strides = [1, 1]} : vector<32x64xf32> to vector<32x8xf32>
    %12 = vector.extract_strided_slice %9 {offsets = [0, 16], sizes = [32, 8], strides = [1, 1]} : vector<32x64xf32> to vector<32x8xf32>
    %13 = vector.extract_strided_slice %9 {offsets = [0, 24], sizes = [32, 8], strides = [1, 1]} : vector<32x64xf32> to vector<32x8xf32>
    %14 = vector.extract_strided_slice %9 {offsets = [0, 32], sizes = [32, 8], strides = [1, 1]} : vector<32x64xf32> to vector<32x8xf32>
    %15 = vector.extract_strided_slice %9 {offsets = [0, 40], sizes = [32, 8], strides = [1, 1]} : vector<32x64xf32> to vector<32x8xf32>
    %16 = vector.extract_strided_slice %9 {offsets = [0, 48], sizes = [32, 8], strides = [1, 1]} : vector<32x64xf32> to vector<32x8xf32>
    %17 = vector.extract_strided_slice %9 {offsets = [0, 56], sizes = [32, 8], strides = [1, 1]} : vector<32x64xf32> to vector<32x8xf32>
    %18 = vector.shape_cast %10 : vector<32x8xf32> to vector<1x32x8xf32>
    %19 = vector.shape_cast %11 : vector<32x8xf32> to vector<1x32x8xf32>
    %20 = vector.shape_cast %12 : vector<32x8xf32> to vector<1x32x8xf32>
    %21 = vector.shape_cast %13 : vector<32x8xf32> to vector<1x32x8xf32>
    %22 = vector.shape_cast %14 : vector<32x8xf32> to vector<1x32x8xf32>
    %23 = vector.shape_cast %15 : vector<32x8xf32> to vector<1x32x8xf32>
    %24 = vector.shape_cast %16 : vector<32x8xf32> to vector<1x32x8xf32>
    %25 = vector.shape_cast %17 : vector<32x8xf32> to vector<1x32x8xf32>
    %26 = tpu.concatenate %18, %19, %20, %21, %22, %23, %24, %25 in 0 : vector<1x32x8xf32>, vector<1x32x8xf32>, vector<1x32x8xf32>, vector<1x32x8xf32>, vector<1x32x8xf32>, vector<1x32x8xf32>, vector<1x32x8xf32>, vector<1x32x8xf32> -> vector<8x32x8xf32>
    %27 = vector.extract_strided_slice %6 {offsets = [0, 64], sizes = [32, 64], strides = [1, 1]} : vector<32x192xf32> to vector<32x64xf32>
    %28 = vector.extract_strided_slice %27 {offsets = [0, 0], sizes = [32, 8], strides = [1, 1]} : vector<32x64xf32> to vector<32x8xf32>
    %29 = vector.extract_strided_slice %27 {offsets = [0, 8], sizes = [32, 8], strides = [1, 1]} : vector<32x64xf32> to vector<32x8xf32>
    %30 = vector.extract_strided_slice %27 {offsets = [0, 16], sizes = [32, 8], strides = [1, 1]} : vector<32x64xf32> to vector<32x8xf32>
    %31 = vector.extract_strided_slice %27 {offsets = [0, 24], sizes = [32, 8], strides = [1, 1]} : vector<32x64xf32> to vector<32x8xf32>
    %32 = vector.extract_strided_slice %27 {offsets = [0, 32], sizes = [32, 8], strides = [1, 1]} : vector<32x64xf32> to vector<32x8xf32>
    %33 = vector.extract_strided_slice %27 {offsets = [0, 40], sizes = [32, 8], strides = [1, 1]} : vector<32x64xf32> to vector<32x8xf32>
    %34 = vector.extract_strided_slice %27 {offsets = [0, 48], sizes = [32, 8], strides = [1, 1]} : vector<32x64xf32> to vector<32x8xf32>
    %35 = vector.extract_strided_slice %27 {offsets = [0, 56], sizes = [32, 8], strides = [1, 1]} : vector<32x64xf32> to vector<32x8xf32>
    %36 = vector.shape_cast %28 : vector<32x8xf32> to vector<1x32x8xf32>
    %37 = vector.shape_cast %29 : vector<32x8xf32> to vector<1x32x8xf32>
    %38 = vector.shape_cast %30 : vector<32x8xf32> to vector<1x32x8xf32>
    %39 = vector.shape_cast %31 : vector<32x8xf32> to vector<1x32x8xf32>
    %40 = vector.shape_cast %32 : vector<32x8xf32> to vector<1x32x8xf32>
    %41 = vector.shape_cast %33 : vector<32x8xf32> to vector<1x32x8xf32>
    %42 = vector.shape_cast %34 : vector<32x8xf32> to vector<1x32x8xf32>
    %43 = vector.shape_cast %35 : vector<32x8xf32> to vector<1x32x8xf32>
    %44 = tpu.concatenate %36, %37, %38, %39, %40, %41, %42, %43 in 0 : vector<1x32x8xf32>, vector<1x32x8xf32>, vector<1x32x8xf32>, vector<1x32x8xf32>, vector<1x32x8xf32>, vector<1x32x8xf32>, vector<1x32x8xf32>, vector<1x32x8xf32> -> vector<8x32x8xf32>
    %45 = vector.extract_strided_slice %6 {offsets = [0, 128], sizes = [32, 64], strides = [1, 1]} : vector<32x192xf32> to vector<32x64xf32>
    %46 = vector.extract_strided_slice %45 {offsets = [0, 0], sizes = [32, 8], strides = [1, 1]} : vector<32x64xf32> to vector<32x8xf32>
    %47 = vector.extract_strided_slice %45 {offsets = [0, 8], sizes = [32, 8], strides = [1, 1]} : vector<32x64xf32> to vector<32x8xf32>
    %48 = vector.extract_strided_slice %45 {offsets = [0, 16], sizes = [32, 8], strides = [1, 1]} : vector<32x64xf32> to vector<32x8xf32>
    %49 = vector.extract_strided_slice %45 {offsets = [0, 24], sizes = [32, 8], strides = [1, 1]} : vector<32x64xf32> to vector<32x8xf32>
    %50 = vector.extract_strided_slice %45 {offsets = [0, 32], sizes = [32, 8], strides = [1, 1]} : vector<32x64xf32> to vector<32x8xf32>
    %51 = vector.extract_strided_slice %45 {offsets = [0, 40], sizes = [32, 8], strides = [1, 1]} : vector<32x64xf32> to vector<32x8xf32>
    %52 = vector.extract_strided_slice %45 {offsets = [0, 48], sizes = [32, 8], strides = [1, 1]} : vector<32x64xf32> to vector<32x8xf32>
    %53 = vector.extract_strided_slice %45 {offsets = [0, 56], sizes = [32, 8], strides = [1, 1]} : vector<32x64xf32> to vector<32x8xf32>
    %54 = vector.shape_cast %46 : vector<32x8xf32> to vector<1x32x8xf32>
    %55 = vector.shape_cast %47 : vector<32x8xf32> to vector<1x32x8xf32>
    %56 = vector.shape_cast %48 : vector<32x8xf32> to vector<1x32x8xf32>
    %57 = vector.shape_cast %49 : vector<32x8xf32> to vector<1x32x8xf32>
    %58 = vector.shape_cast %50 : vector<32x8xf32> to vector<1x32x8xf32>
    %59 = vector.shape_cast %51 : vector<32x8xf32> to vector<1x32x8xf32>
    %60 = vector.shape_cast %52 : vector<32x8xf32> to vector<1x32x8xf32>
    %61 = vector.shape_cast %53 : vector<32x8xf32> to vector<1x32x8xf32>
    %62 = tpu.concatenate %54, %55, %56, %57, %58, %59, %60, %61 in 0 : vector<1x32x8xf32>, vector<1x32x8xf32>, vector<1x32x8xf32>, vector<1x32x8xf32>, vector<1x32x8xf32>, vector<1x32x8xf32>, vector<1x32x8xf32>, vector<1x32x8xf32> -> vector<8x32x8xf32>
    %63 = vector.extract_strided_slice %26 {offsets = [0, 0, 0], sizes = [8, 16, 8], strides = [1, 1, 1]} : vector<8x32x8xf32> to vector<8x16x8xf32>
    %64 = vector.extract_strided_slice %44 {offsets = [0, 0, 0], sizes = [8, 16, 8], strides = [1, 1, 1]} : vector<8x32x8xf32> to vector<8x16x8xf32>
    %65 = vector.extract_strided_slice %62 {offsets = [0, 0, 0], sizes = [8, 16, 8], strides = [1, 1, 1]} : vector<8x32x8xf32> to vector<8x16x8xf32>
    "tpu.trace_start"() <{level = 10 : i32, message = "hqd,hkd->hqk"}> : () -> ()
    %cst_7 = arith.constant dense<0.000000e+00> : vector<8x16x16xf32>
    %66 = tpu.matmul %63, %64, %cst_7 {dimension_numbers = #tpu.dot_dimension_numbers<[2], [2], [1], [1], [0, 0, 0, 1, 1, 1], [0], [0]>} : vector<8x16x8xf32>, vector<8x16x8xf32>, vector<8x16x16xf32> -> vector<8x16x16xf32>
    "tpu.trace_stop"() : () -> ()
    %cst_8 = arith.constant dense<0xFF800000> : vector<8x16xf32>
    %67 = vector.multi_reduction <maximumf>, %66, %cst_8 [2] : vector<8x16x16xf32> to vector<8x16xf32>
    %68 = vector.shape_cast %67 : vector<8x16xf32> to vector<8x16x1xf32>
    %69 = vector.broadcast %68 : vector<8x16x1xf32> to vector<8x16x16xf32>
    %70 = arith.subf %66, %69 : vector<8x16x16xf32>
    %71 = math.exp %70 : vector<8x16x16xf32>
    %cst_9 = arith.constant dense<0.000000e+00> : vector<8x16xf32>
    %72 = vector.multi_reduction <add>, %71, %cst_9 [2] : vector<8x16x16xf32> to vector<8x16xf32>
    %73 = vector.shape_cast %72 : vector<8x16xf32> to vector<8x16x1xf32>
    "tpu.trace_start"() <{level = 10 : i32, message = "hqk,hkd->hqd"}> : () -> ()
    %cst_10 = arith.constant dense<0.000000e+00> : vector<8x16x8xf32>
    %74 = tpu.matmul %71, %65, %cst_10 {dimension_numbers = #tpu.dot_dimension_numbers<[2], [1], [1], [2], [0, 0, 0, 1, 1, 2], [0], [0]>} : vector<8x16x16xf32>, vector<8x16x8xf32>, vector<8x16x8xf32> -> vector<8x16x8xf32>
    "tpu.trace_stop"() : () -> ()
    %75 = tpu.reciprocal %73 : vector<8x16x1xf32> -> vector<8x16x1xf32>
    %76 = vector.broadcast %75 : vector<8x16x1xf32> to vector<8x16x8xf32>
    %77 = arith.mulf %74, %76 : vector<8x16x8xf32>
    %78 = vector.extract_strided_slice %77 {offsets = [0, 0, 0], sizes = [1, 16, 8], strides = [1, 1, 1]} : vector<8x16x8xf32> to vector<1x16x8xf32>
    %79 = vector.shape_cast %78 : vector<1x16x8xf32> to vector<16x8xf32>
    %80 = vector.extract_strided_slice %77 {offsets = [1, 0, 0], sizes = [1, 16, 8], strides = [1, 1, 1]} : vector<8x16x8xf32> to vector<1x16x8xf32>
    %81 = vector.shape_cast %80 : vector<1x16x8xf32> to vector<16x8xf32>
    %82 = vector.extract_strided_slice %77 {offsets = [2, 0, 0], sizes = [1, 16, 8], strides = [1, 1, 1]} : vector<8x16x8xf32> to vector<1x16x8xf32>
    %83 = vector.shape_cast %82 : vector<1x16x8xf32> to vector<16x8xf32>
    %84 = vector.extract_strided_slice %77 {offsets = [3, 0, 0], sizes = [1, 16, 8], strides = [1, 1, 1]} : vector<8x16x8xf32> to vector<1x16x8xf32>
    %85 = vector.shape_cast %84 : vector<1x16x8xf32> to vector<16x8xf32>
    %86 = vector.extract_strided_slice %77 {offsets = [4, 0, 0], sizes = [1, 16, 8], strides = [1, 1, 1]} : vector<8x16x8xf32> to vector<1x16x8xf32>
    %87 = vector.shape_cast %86 : vector<1x16x8xf32> to vector<16x8xf32>
    %88 = vector.extract_strided_slice %77 {offsets = [5, 0, 0], sizes = [1, 16, 8], strides = [1, 1, 1]} : vector<8x16x8xf32> to vector<1x16x8xf32>
    %89 = vector.shape_cast %88 : vector<1x16x8xf32> to vector<16x8xf32>
    %90 = vector.extract_strided_slice %77 {offsets = [6, 0, 0], sizes = [1, 16, 8], strides = [1, 1, 1]} : vector<8x16x8xf32> to vector<1x16x8xf32>
    %91 = vector.shape_cast %90 : vector<1x16x8xf32> to vector<16x8xf32>
    %92 = vector.extract_strided_slice %77 {offsets = [7, 0, 0], sizes = [1, 16, 8], strides = [1, 1, 1]} : vector<8x16x8xf32> to vector<1x16x8xf32>
    %93 = vector.shape_cast %92 : vector<1x16x8xf32> to vector<16x8xf32>
    %94 = tpu.concatenate %79, %81, %83, %85, %87, %89, %91, %93 in 1 : vector<16x8xf32>, vector<16x8xf32>, vector<16x8xf32>, vector<16x8xf32>, vector<16x8xf32>, vector<16x8xf32>, vector<16x8xf32>, vector<16x8xf32> -> vector<16x64xf32>
    %95 = vector.extract_strided_slice %26 {offsets = [0, 16, 0], sizes = [8, 16, 8], strides = [1, 1, 1]} : vector<8x32x8xf32> to vector<8x16x8xf32>
    %96 = vector.extract_strided_slice %44 {offsets = [0, 16, 0], sizes = [8, 16, 8], strides = [1, 1, 1]} : vector<8x32x8xf32> to vector<8x16x8xf32>
    %97 = vector.extract_strided_slice %62 {offsets = [0, 16, 0], sizes = [8, 16, 8], strides = [1, 1, 1]} : vector<8x32x8xf32> to vector<8x16x8xf32>
    "tpu.trace_start"() <{level = 10 : i32, message = "hqd,hkd->hqk"}> : () -> ()
    %cst_11 = arith.constant dense<0.000000e+00> : vector<8x16x16xf32>
    %98 = tpu.matmul %95, %96, %cst_11 {dimension_numbers = #tpu.dot_dimension_numbers<[2], [2], [1], [1], [0, 0, 0, 1, 1, 1], [0], [0]>} : vector<8x16x8xf32>, vector<8x16x8xf32>, vector<8x16x16xf32> -> vector<8x16x16xf32>
    "tpu.trace_stop"() : () -> ()
    %cst_12 = arith.constant dense<0xFF800000> : vector<8x16xf32>
    %99 = vector.multi_reduction <maximumf>, %98, %cst_12 [2] : vector<8x16x16xf32> to vector<8x16xf32>
    %100 = vector.shape_cast %99 : vector<8x16xf32> to vector<8x16x1xf32>
    %101 = vector.broadcast %100 : vector<8x16x1xf32> to vector<8x16x16xf32>
    %102 = arith.subf %98, %101 : vector<8x16x16xf32>
    %103 = math.exp %102 : vector<8x16x16xf32>
    %cst_13 = arith.constant dense<0.000000e+00> : vector<8x16xf32>
    %104 = vector.multi_reduction <add>, %103, %cst_13 [2] : vector<8x16x16xf32> to vector<8x16xf32>
    %105 = vector.shape_cast %104 : vector<8x16xf32> to vector<8x16x1xf32>
    "tpu.trace_start"() <{level = 10 : i32, message = "hqk,hkd->hqd"}> : () -> ()
    %cst_14 = arith.constant dense<0.000000e+00> : vector<8x16x8xf32>
    %106 = tpu.matmul %103, %97, %cst_14 {dimension_numbers = #tpu.dot_dimension_numbers<[2], [1], [1], [2], [0, 0, 0, 1, 1, 2], [0], [0]>} : vector<8x16x16xf32>, vector<8x16x8xf32>, vector<8x16x8xf32> -> vector<8x16x8xf32>
    "tpu.trace_stop"() : () -> ()
    %107 = tpu.reciprocal %105 : vector<8x16x1xf32> -> vector<8x16x1xf32>
    %108 = vector.broadcast %107 : vector<8x16x1xf32> to vector<8x16x8xf32>
    %109 = arith.mulf %106, %108 : vector<8x16x8xf32>
    %110 = vector.extract_strided_slice %109 {offsets = [0, 0, 0], sizes = [1, 16, 8], strides = [1, 1, 1]} : vector<8x16x8xf32> to vector<1x16x8xf32>
    %111 = vector.shape_cast %110 : vector<1x16x8xf32> to vector<16x8xf32>
    %112 = vector.extract_strided_slice %109 {offsets = [1, 0, 0], sizes = [1, 16, 8], strides = [1, 1, 1]} : vector<8x16x8xf32> to vector<1x16x8xf32>
    %113 = vector.shape_cast %112 : vector<1x16x8xf32> to vector<16x8xf32>
    %114 = vector.extract_strided_slice %109 {offsets = [2, 0, 0], sizes = [1, 16, 8], strides = [1, 1, 1]} : vector<8x16x8xf32> to vector<1x16x8xf32>
    %115 = vector.shape_cast %114 : vector<1x16x8xf32> to vector<16x8xf32>
    %116 = vector.extract_strided_slice %109 {offsets = [3, 0, 0], sizes = [1, 16, 8], strides = [1, 1, 1]} : vector<8x16x8xf32> to vector<1x16x8xf32>
    %117 = vector.shape_cast %116 : vector<1x16x8xf32> to vector<16x8xf32>
    %118 = vector.extract_strided_slice %109 {offsets = [4, 0, 0], sizes = [1, 16, 8], strides = [1, 1, 1]} : vector<8x16x8xf32> to vector<1x16x8xf32>
    %119 = vector.shape_cast %118 : vector<1x16x8xf32> to vector<16x8xf32>
    %120 = vector.extract_strided_slice %109 {offsets = [5, 0, 0], sizes = [1, 16, 8], strides = [1, 1, 1]} : vector<8x16x8xf32> to vector<1x16x8xf32>
    %121 = vector.shape_cast %120 : vector<1x16x8xf32> to vector<16x8xf32>
    %122 = vector.extract_strided_slice %109 {offsets = [6, 0, 0], sizes = [1, 16, 8], strides = [1, 1, 1]} : vector<8x16x8xf32> to vector<1x16x8xf32>
    %123 = vector.shape_cast %122 : vector<1x16x8xf32> to vector<16x8xf32>
    %124 = vector.extract_strided_slice %109 {offsets = [7, 0, 0], sizes = [1, 16, 8], strides = [1, 1, 1]} : vector<8x16x8xf32> to vector<1x16x8xf32>
    %125 = vector.shape_cast %124 : vector<1x16x8xf32> to vector<16x8xf32>
    %126 = tpu.concatenate %111, %113, %115, %117, %119, %121, %123, %125 in 1 : vector<16x8xf32>, vector<16x8xf32>, vector<16x8xf32>, vector<16x8xf32>, vector<16x8xf32>, vector<16x8xf32>, vector<16x8xf32>, vector<16x8xf32> -> vector<16x64xf32>
    %127 = tpu.concatenate %94, %126 in 0 : vector<16x64xf32>, vector<16x64xf32> -> vector<32x64xf32>
    %c0_15 = arith.constant 0 : index
    %c0_16 = arith.constant 0 : index
    %128 = vector.load %arg4[%c0_15, %c0_16] : memref<64x64xf32, #tpu.memory_space<vmem>>, vector<64x64xf32>
    %cst_17 = arith.constant dense<0.000000e+00> : vector<32x64xf32>
    %129 = tpu.matmul %127, %128, %cst_17 {dimension_numbers = #tpu.dot_dimension_numbers<[1], [0], [0], [1], [0, 0, 1, 1], [], []>} : vector<32x64xf32>, vector<64x64xf32>, vector<32x64xf32> -> vector<32x64xf32>
    %c0_18 = arith.constant 0 : index
    %c0_19 = arith.constant 0 : index
    %130 = vector.load %arg5[%c0_18, %c0_19] : memref<1x64xf32, #tpu.memory_space<vmem>>, vector<1x64xf32>
    %131 = vector.broadcast %130 : vector<1x64xf32> to vector<32x64xf32>
    %132 = arith.addf %129, %131 : vector<32x64xf32>
    %133 = vector.shape_cast %132 : vector<32x64xf32> to vector<2x16x64xf32>
    %c0_20 = arith.constant 0 : index
    %c0_21 = arith.constant 0 : index
    %c0_22 = arith.constant 0 : index
    %134 = vector.load %arg6[%c0_20, %c0_21, %c0_22] : memref<2x16x64xf32, #tpu.memory_space<vmem>>, vector<2x16x64xf32>
    tpu.vector_store %arg6[%c0_20, %c0_21, %c0_22], %133 {strides = array<i32>} : memref<2x16x64xf32, #tpu.memory_space<vmem>>, vector<2x16x64xf32>,
    return
  }
  func.func @transform_0(%arg0: i32) -> (i32, i32, i32) {
    %c0_i32 = arith.constant 0 : i32
    %c0_i32_0 = arith.constant 0 : i32
    %c0_i32_1 = arith.constant 0 : i32
    return %arg0, %c0_i32, %c0_i32_0 : i32, i32, i32
  }
  func.func @transform_1(%arg0: i32) -> (i32, i32) {
    %c0_i32 = arith.constant 0 : i32
    %c0_i32_0 = arith.constant 0 : i32
    %c0_i32_1 = arith.constant 0 : i32
    return %c0_i32, %c0_i32_0 : i32, i32
  }
  func.func @transform_2(%arg0: i32) -> (i32, i32) {
    %c0_i32 = arith.constant 0 : i32
    %c0_i32_0 = arith.constant 0 : i32
    %c0_i32_1 = arith.constant 0 : i32
    return %c0_i32, %c0_i32_0 : i32, i32
  }
  func.func @transform_3(%arg0: i32) -> (i32, i32) {
    %c0_i32 = arith.constant 0 : i32
    %c0_i32_0 = arith.constant 0 : i32
    %c0_i32_1 = arith.constant 0 : i32
    return %c0_i32, %c0_i32_0 : i32, i32
  }
  func.func @transform_4(%arg0: i32) -> (i32, i32) {
    %c0_i32 = arith.constant 0 : i32
    %c0_i32_0 = arith.constant 0 : i32
    %c0_i32_1 = arith.constant 0 : i32
    return %c0_i32, %c0_i32_0 : i32, i32
  }
  func.func @transform_5(%arg0: i32) -> (i32, i32, i32) {
    %c0_i32 = arith.constant 0 : i32
    %c0_i32_0 = arith.constant 0 : i32
    %c0_i32_1 = arith.constant 0 : i32
    return %arg0, %c0_i32, %c0_i32_0 : i32, i32, i32
  }
}

</mosaic_0001>

<bundles_post_ra>
// kernel: tpu_custom_call.1
= control target key start
LH: loop header
LB: loop body
LE: loop exit
PB: predicated region body
PF: predicated region fallthrough
CT: control target
= control target key end

     0   :  { %10 = vsyncpa [#allocation3], 0  ;;  %s5722_s0 = inlined_call_operand.hbm [shape: f32[2,16,64], index: 0, kind: input, shape index: {}]   ;;  %s5723_s1 = inlined_call_operand.hbm [shape: f32[64,192], index: 1, kind: input, shape index: {}]   ;;  %s5724_s2 = inlined_call_operand.vmem [shape: f32[1,192], index: 2, kind: input, shape index: {}]   ;;  %s5725_s3 = inlined_call_operand.hbm [shape: f32[64,64], index: 3, kind: input, shape index: {}]   ;;  %s5726_s4 = inlined_call_operand.vmem [shape: f32[1,64], index: 4, kind: input, shape index: {}]   ;;  %s5727_s5 = inlined_call_operand.hbm [shape: f32[2,16,64], index: 5, kind: output, shape index: {}]  }
   0x1   :  { %11 = vsyncpa [#allocation6], 0 }
   0x2   :  { %12 = vsyncpa [#allocation4], 0  ;;  %s4876_s18 = smov [#allocation5]   ;;  %s4782_s22 = scalar_lea.hbm %s5723_s1, 2048 }
   0x3   :  { %s30_s19 = sshll.u32 %s4876_s18, 4  ;;  %p4783_p0 = scmp.ne.s32.totalorder %s5723_s1, %s4782_s22  ;;  %s31_s19 = int_to_ptr.vmem [resolvable:$true] %s30_s19 }
   0x4   :  { %p4786_p1 = scmp.lt.u32.totalorder %s4782_s22, %s5723_s1 }
   0x6   :  { %p4788_p2 = pnand %p4786_p1, %p4783_p0 }
   0x8   :  { %4791 = shalt.err (!%p4788_p2)
}
   0x9   :  { %s4792_s27 = scalar_lea.vmem %s31_s19, 2048  ;;  %p4797_p4 = scmp.lt.s32.totalorder %s31_s19, %s31_s19 }
   0xa   :  { %p4793_p3 = scmp.ne.s32.totalorder %s31_s19, %s4792_s27  ;;  %p4798_p5 = scmp.lt.s32.totalorder %s4792_s27, %s4792_s27 }
   0xc   :  { %p4799_p6 = por %p4798_p5, %p4797_p4 }
   0xe   :  { %p4800_p7 = pnand %p4799_p6, %p4793_p3 }
  0x10   :  { %4803 = shalt.err (!%p4800_p7)
}
  0x11   :  { %s4877_s28 = smov 256   ;;  %s4878_s29 = smov 16  }
  0x12   :  { %36 = dma.hbm_to_vmem [thread:$0]  %s5723_s1, 2048, %s31_s19, [#allocation6], %s4877_s28, %s4877_s28, %s4878_s29  }
  0x13   :  { %s4879_s7 = smov [#allocation2]   ;;  %s4804_s11 = scalar_lea.hbm %s5722_s0, 512 }
  0x14   :  { %s18_s8 = sshll.u32 %s4879_s7, 4  ;;  %p4805_p8 = scmp.ne.s32.totalorder %s5722_s0, %s4804_s11  ;;  %s19_s8 = int_to_ptr.vmem [resolvable:$true] %s18_s8 }
  0x15   :  { %p4808_p9 = scmp.lt.u32.totalorder %s4804_s11, %s5722_s0 }
  0x17   :  { %p4810_p10 = pnand %p4808_p9, %p4805_p8 }
  0x19   :  { %4813 = shalt.err (!%p4810_p10)
}
  0x1a   :  { %s4814_s16 = scalar_lea.vmem %s19_s8, 512  ;;  %p4819_p12 = scmp.lt.s32.totalorder %s19_s8, %s19_s8 }
  0x1b   :  { %p4815_p11 = scmp.ne.s32.totalorder %s19_s8, %s4814_s16  ;;  %p4820_p13 = scmp.lt.s32.totalorder %s4814_s16, %s4814_s16 }
  0x1d   :  { %p4821_p0 = por %p4820_p13, %p4819_p12 }
  0x1f   :  { %p4822_p1 = pnand %p4821_p0, %p4815_p11 }
  0x21   :  { %4825 = shalt.err (!%p4822_p1)
}
  0x22   :  { %s4880_s1 = smov 128   ;;  %s4881_s17 = smov 8  }
  0x23   :  { %24 = dma.hbm_to_vmem [thread:$0]  %s5722_s0, 512, %s19_s8, [#allocation3], %s4880_s1, %s4880_s1, %s4881_s17  }
  0x24   :  { %s4882_s20 = smov [#allocation7]   ;;  %s4826_s24 = scalar_lea.hbm %s5725_s3, 1024 }
  0x25   :  { %s44_s21 = sshll.u32 %s4882_s20, 4  ;;  %p4827_p2 = scmp.ne.s32.totalorder %s5725_s3, %s4826_s24  ;;  %s45_s21 = int_to_ptr.vmem [resolvable:$true] %s44_s21 }
  0x26   :  { %p4830_p3 = scmp.lt.u32.totalorder %s4826_s24, %s5725_s3 }
  0x28   :  { %p4832_p4 = pnand %p4830_p3, %p4827_p2 }
  0x2a   :  { %4835 = shalt.err (!%p4832_p4)
}
  0x2b   :  { %s4836_s30 = scalar_lea.vmem %s45_s21, 1024  ;;  %p4841_p6 = scmp.lt.s32.totalorder %s45_s21, %s45_s21 }
  0x2c   :  { %p4837_p5 = scmp.ne.s32.totalorder %s45_s21, %s4836_s30  ;;  %p4842_p7 = scmp.lt.s32.totalorder %s4836_s30, %s4836_s30 }
  0x2e   :  { %p4843_p8 = por %p4842_p7, %p4841_p6 }
  0x30   :  { %p4844_p9 = pnand %p4843_p8, %p4837_p5 }
  0x32   :  { %4847 = shalt.err (!%p4844_p9)
}
  0x33   :  { %50 = dma.hbm_to_vmem [thread:$0]  %s5725_s3, 1024, %s45_s21, [#allocation6], %s4880_s1, %s4880_s1, %s4881_s17  }
  0x34   :  { %4870 = dma.done.wait [#allocation3], 512  }
  0x35   :  { %4871 = vsyncadd [#allocation3], 4294966784 }
  0x36   :  { %4872 = dma.done.wait [#allocation6], 3072  }
  0x37   :  { %4873 = vsyncadd [#allocation6], 4294964224  ;;  %v4883_v0 = vmov 0.0   ;;  %v67_v1 = vld [vmem:[#allocation5 + $0x8] sm:$0xff]  ;;  %v69_v2 = vld [vmem:[#allocation5 + $0x18] sm:$0xff]  ;;  %vm94_vm0 = vcmask 523264   ;;  %v84_v29 = vlaneseq }
  0x38   :  { %171 = vmatprep.mubr.f32.mxu0 %v4883_v0  ;;  %v66_v3 = vld [vmem:[#allocation5] sm:$0xff]  ;;  %v4220_v4 = vpack.c.bf16 %v69_v2, %v67_v1  ;;  %v68_v5 = vld [vmem:[#allocation5 + $0x10] sm:$0xff]  ;;  %v71_v6 = vld [vmem:[#allocation5 + $0x28] sm:$0xff]  ;;  %vm412_vm1 = vcmask 64512   ;;  %s4885_s8 = smov 120   ;;  %s4886_s9 = smov 96  }
  0x39   :  { %v73_v7 = vld [vmem:[#allocation5 + $0x38] sm:$0xff]  ;;  %v4222_v8 = vpack.c.bf16 %v68_v5, %v66_v3  ;;  %v70_v10 = vld [vmem:[#allocation5 + $0x20] sm:$0xff]  ;;  %v72_v11 = vld [vmem:[#allocation5 + $0x30] sm:$0xff]  ;;  %v85_v30 = vshrl.u32 %v84_v29, 7  ;;  %s4887_s10 = smov 112   ;;  %s4888_s11 = smov 80  }
  0x3a   :  { %v4224_v9 = vpack.c.bf16 %v73_v7, %v71_v6  ;;  %v75_v12 = vld [vmem:[#allocation5 + $0x48] sm:$0xff]  ;;  %4221 = vmatprep.subr.bf16.mxu0 %v4220_v4  ;;  %v77_v13 = vld [vmem:[#allocation5 + $0x58] sm:$0xff]  ;;  %v4226_v14 = vpack.c.bf16 %v72_v11, %v70_v10  ;;  %v74_v16 = vld [vmem:[#allocation5 + $0x40] sm:$0xff]  ;;  %s4889_s12 = smov 88   ;;  %s4890_s13 = smov 64   ;;  %vm1105_vm3 = vcmask 130048  }
  0x3b   :  { %4223 = vmatpush1.bf16.msra.mxu0 %v4222_v8  ;;  %v4228_v15 = vpack.c.bf16 %v77_v13, %v75_v12  ;;  %v76_v17 = vld [vmem:[#allocation5 + $0x50] sm:$0xff]  ;;  %v79_v18 = vld [vmem:[#allocation5 + $0x68] sm:$0xff]  ;;  %v81_v19 = vld [vmem:[#allocation5 + $0x78] sm:$0xff]  ;;  %v86_v31 = vsub.s32 0, %v85_v30  ;;  %v90_v34 = vsub.s32 1, %v85_v30  ;;  %s4891_s14 = smov 72  }
  0x3c   :  { %4225 = vmatprep.subr.bf16.mxu0 %v4224_v9  ;;  %v4230_v20 = vpack.c.bf16 %v76_v17, %v74_v16  ;;  %v4232_v21 = vpack.c.bf16 %v81_v19, %v79_v18  ;;  %v78_v22 = vld [vmem:[#allocation5 + $0x60] sm:$0xff]  ;;  %v80_v23 = vld [vmem:[#allocation5 + $0x70] sm:$0xff]  ;;  %v63_v26 = vld [vmem:[#allocation2 + $0x8] sm:$0xff]  ;;  %s4892_s15 = smov 24   ;;  %s4893_s16 = smov 32   ;;  %vm1990_vm4 = vcmask 195584  }
  0x3d   :  { %v4234_v24 = vpack.c.bf16 %v80_v23, %v78_v22  ;;  %v62_v25 = vld [vmem:[#allocation2] sm:$0xff]  ;;  %v64_v27 = vld [vmem:[#allocation2 + $0x10] sm:$0xff]  ;;  %v65_v28 = vld [vmem:[#allocation2 + $0x18] sm:$0xff]  ;;  %s4894_s18 = smov 40   ;;  %s4895_s19 = smov 48   ;;  %vm1993_vm5 = vcmask 261120  }
  0x3e   :  { %v82_v32 = vld [vmem:[%s5724_s2] sm:$0x3]  ;;  %s4884_s2 = smov 104   ;;  %vm5010_vm2 = vmpackc.low %vm412_vm1, %vm412_vm1  ;;  %s4896_s20 = smov 56   ;;  %vm1996_vm6 = vcmask 326656   ;;  %vm1999_vm7 = vcmask 392192  }
  0x3f   :  { %4227 = vmatpush1.bf16.msra.mxu0 %v4226_v14  ;;  %v87_v33 = vrot.slane %v82_v32, %v86_v31  ;;  %v4978_v38 = vrot.slane %v82_v32, %v90_v34  ;;  %vm2002_vm8 = vcmask 457728   ;;  %s4897_s22 = smov [#allocation8]  }
  0x40   :  { %4229 = vmatprep.subr.bf16.mxu0 %v4228_v15  ;;  %s3716_s23 = sshll.u32 %s4897_s22, 4  ;;  %s3717_s23 = int_to_ptr.vmem [resolvable:$true] %s3716_s23 }
  0x41   :  { %p4853_p11 = scmp.lt.s32.totalorder %s3717_s23, %s3717_s23 }
  0x43   :  { %4231 = vmatpush1.bf16.msra.mxu0 %v4230_v20 }
  0x44   :  { %4233 = vmatprep.subr.bf16.mxu0 %v4232_v21 }
  0x47   :  { %4235 = vmatpush1.bf16.msra.mxu0 %v4234_v24 }
  0x4a   :  { %3729 = vmatmul.mubr.msk.f32.vlgmr.msra.gmra.mrb[0].mxu0 %vm94_vm0, %v62_v25 }
  0x4b   :  { %177 = vmatprep.mubr.f32.mxu0 %v4883_v0 }
  0x4e   :  { %3730 = vmatmul.mubr.msk.f32.gmra.mrb[2].mxu0 %vm94_vm0, %v63_v26 }
  0x4f   :  { %183 = vmatprep.mubr.f32.mxu0 %v4883_v0 }
  0x52   :  { %3731 = vmatmul.mubr.msk.f32.gmra.mrb[4].mxu0 %vm94_vm0, %v64_v27 }
  0x53   :  { %189 = vmatprep.mubr.f32.mxu0 %v4883_v0 }
  0x56   :  { %3732 = vmatmul.mubr.msk.f32.gmra.mrb[6].mxu0 %vm94_vm0, %v65_v28 }
 0x11d   :  { %v173_v35 = vpop.f32.mrb[0].mxu0 }
 0x11e   :  { %v174_v36 = vadd.f32 %v173_v35, %v87_v33  ;;  %v175_v37 = vpop.f32.mrb[1].mxu0 }
 0x11f   :  { %v176_v43 = vadd.f32 %v175_v37, %v4978_v38 }
 0x120   :  { %v4980_v39 = vmul.f32 0.35355338, %v174_v36 }
 0x121   :  { %v179_v40 = vpop.f32.mrb[2].mxu0 }
 0x122   :  { %v180_v41 = vadd.f32 %v179_v40, %v87_v33  ;;  %v181_v42 = vpop.f32.mrb[3].mxu0  ;;  %3978 = vmatprep.mubr.msk.f32.mxu1 %vm412_vm1, %v4980_v39 }
 0x123   :  { %v182_v44 = vadd.f32 %v181_v42, %v4978_v38 }
 0x124   :  { %v4444_v45 = vpack.i.bf16 %v180_v41, %v174_v36  ;;  %v197_v58 = vmul.f32 0.35355338, %v180_v41 }
 0x125   :  { %v4988_v46 = vpack.i.bf16 %v182_v44, %v176_v43  ;;  %v4990_v47 = vpack.c.bf16 %v182_v44, %v176_v43  ;;  %v185_v48 = vpop.f32.mrb[4].mxu0 }
 0x126   :  { %4445 = vrot.lane.b32.xlu1 %v4444_v45, %s4884_s2  ;;  %4435 = vrot.lane.b32.xlu0 %v4444_v45, %s4885_s8  ;;  %v4998_v49 = vadd.f32 %v185_v48, %v87_v33  ;;  %v187_v50 = vpop.f32.mrb[5].mxu0 }
 0x127   :  { %v188_v4 = vadd.f32 %v187_v50, %v4978_v38 }
 0x129   :  { %v191_v51 = vpop.f32.mrb[6].mxu0 }
 0x12a   :  { %4450 = vrot.lane.b32.xlu1 %v4444_v45, %s4886_s9  ;;  %4440 = vrot.lane.b32.xlu0 %v4444_v45, %s4887_s10  ;;  %v5000_v52 = vadd.f32 %v191_v51, %v87_v33  ;;  %v193_v3 = vpop.f32.mrb[7].mxu0 }
 0x12b   :  { %v194_v5 = vadd.f32 %v193_v3, %v4978_v38 }
 0x12c   :  { %v4509_v2 = vpack.i.bf16 %v5000_v52, %v4998_v49 }
 0x12d   :  { %v5067_v6 = vpack.i.bf16 %v194_v5, %v188_v4  ;;  %v5069_v7 = vpack.c.bf16 %v194_v5, %v188_v4 }
 0x12e   :  { %4460 = vrot.lane.b32.xlu1 %v4444_v45, %s4888_s11  ;;  %4455 = vrot.lane.b32.xlu0 %v4444_v45, %s4889_s12 }
 0x132   :  { %4470 = vrot.lane.b32.xlu1 %v4444_v45, %s4890_s13  ;;  %4465 = vrot.lane.b32.xlu0 %v4444_v45, %s4891_s14 }
 0x198   :  { %v4446_v53 = vpop.permute.xlu1 %4445  ;;  %v4436_v54 = vpop.permute.xlu0 %4435 }
 0x199   :  { %4475 = vrot.lane.b32.xlu0 %v4436_v54, %s4890_s13 }
 0x19c   :  { %v4451_v55 = vpop.permute.xlu1 %4450  ;;  %v4441_v56 = vpop.permute.xlu0 %4440 }
 0x19d   :  { %4480 = vrot.lane.b32.xlu1 %v4441_v56, %s4890_s13  ;;  %204 = vrot.lane.b32.xlu0 %v4980_v39, %s4885_s8 }
 0x1a0   :  { %v4461_v57 = vpop.permute.xlu1 %4460  ;;  %v4456_v0 = vpop.permute.xlu0 %4455 }
 0x1a1   :  { %206 = vrot.lane.b32.xlu1 %v197_v58, %s4885_s8  ;;  %214 = vrot.lane.b32.xlu0 %v197_v58, %s4887_s10 }
 0x1a4   :  { %v4471_v59 = vpop.permute.xlu1 %4470  ;;  %v4466_v1 = vpop.permute.xlu0 %4465 }
 0x1a5   :  { %v4473_v60 = vunpack.i.h.bf16 %v4471_v59  ;;  %v4472_v61 = vunpack.i.l.bf16 %v4471_v59  ;;  %212 = vrot.lane.b32.xlu1 %v4980_v39, %s4887_s10  ;;  %4485 = vrot.lane.b32.xlu0 %v4446_v53, %s4890_s13 }
 0x1a7   :  { %v4236_v63 = vpack.c.bf16 %v4473_v60, %v4472_v61 }
 0x1a9   :  { %4238 = vmatprep.subr.msk.bf16.mxu1 %vm5010_vm2, %v4236_v63  ;;  %220 = vrot.lane.b32.xlu1 %v4980_v39, %s4884_s2 }
 0x1aa   :  { %4241 = vmatpush3.bf16.xpose.msk.msra.mxu1 %vm5010_vm2, %v4236_v63  ;;  %222 = vrot.lane.b32.xlu0 %v197_v58, %s4884_s2 }
 0x1ad   :  { %4490 = vrot.lane.b32.xlu1 %v4451_v55, %s4890_s13 }
 0x1ae   :  { %4495 = vrot.lane.b32.xlu0 %v4456_v0, %s4890_s13 }
 0x1b1   :  { %3979 = vmatmul.mubr.msk.f32.vlgmr.msra.gmra.mrb[0].mxu1 %vm412_vm1, %v197_v58  ;;  %228 = vrot.lane.b32.xlu1 %v4980_v39, %s4886_s9 }
 0x1b2   :  { %236 = vrot.lane.b32.xlu0 %v4980_v39, %s4889_s12 }
 0x1b5   :  { %230 = vrot.lane.b32.xlu1 %v197_v58, %s4886_s9 }
 0x1b6   :  { %4500 = vrot.lane.b32.xlu0 %v4461_v57, %s4890_s13 }
 0x1b9   :  { %4505 = vrot.lane.b32.xlu1 %v4466_v1, %s4890_s13 }
 0x1ba   :  { %238 = vrot.lane.b32.xlu0 %v197_v58, %s4889_s12 }
 0x1bd   :  { %244 = vrot.lane.b32.xlu1 %v4980_v39, %s4888_s11 }
 0x1be   :  { %246 = vrot.lane.b32.xlu0 %v197_v58, %s4888_s11 }
 0x1c1   :  { %252 = vrot.lane.b32.xlu1 %v4980_v39, %s4891_s14 }
 0x1c2   :  { %254 = vrot.lane.b32.xlu0 %v197_v58, %s4891_s14 }
 0x1c5   :  { %4510 = vrot.lane.b32.xlu1 %v4509_v2, %s4885_s8 }
 0x1c6   :  { %4515 = vrot.lane.b32.xlu0 %v4509_v2, %s4887_s10 }
 0x1c9   :  { %4520 = vrot.lane.b32.xlu1 %v4509_v2, %s4884_s2 }
 0x1ca   :  { %4525 = vrot.lane.b32.xlu0 %v4509_v2, %s4886_s9 }
 0x1cd   :  { %4530 = vrot.lane.b32.xlu1 %v4509_v2, %s4889_s12 }
 0x1ce   :  { %4535 = vrot.lane.b32.xlu0 %v4509_v2, %s4888_s11 }
 0x1d1   :  { %4540 = vrot.lane.b32.xlu1 %v4509_v2, %s4891_s14 }
 0x1d2   :  { %4550 = vrot.lane.b32.xlu0 %v4988_v46, %s4887_s10 }
 0x1d5   :  { %4545 = vrot.lane.b32.xlu1 %v4988_v46, %s4885_s8 }
 0x1d6   :  { %4565 = vrot.lane.b32.xlu0 %v4988_v46, %s4889_s12 }
 0x1d9   :  { %4555 = vrot.lane.b32.xlu1 %v4988_v46, %s4884_s2 }
 0x1da   :  { %4575 = vrot.lane.b32.xlu0 %v4988_v46, %s4891_s14 }
 0x1dd   :  { %4560 = vrot.lane.b32.xlu1 %v4988_v46, %s4886_s9 }
 0x1e1   :  { %4570 = vrot.lane.b32.xlu1 %v4988_v46, %s4888_s11 }
 0x1e5   :  { %4580 = vrot.lane.b32.xlu1 %v4509_v2, %s4890_s13 }
 0x20b   :  { %v4476_v8 = vpop.permute.xlu0 %4475 }
 0x20c   :  { %v4478_v9 = vunpack.i.h.bf16 %v4476_v8  ;;  %v4477_v10 = vunpack.i.l.bf16 %v4476_v8 }
 0x20e   :  { %v4242_v11 = vpack.c.bf16 %v4478_v9, %v4477_v10 }
 0x20f   :  { %v4481_v12 = vpop.permute.xlu1 %4480  ;;  %v205_v13 = vpop.permute.xlu0 %204 }
 0x210   :  { %v4483_v14 = vunpack.i.h.bf16 %v4481_v12  ;;  %v4482_v15 = vunpack.i.l.bf16 %v4481_v12  ;;  %4244 = vmatprep.subr.msk.bf16.mxu1 %vm5010_vm2, %v4242_v11  ;;  %3985 = vmatprep.mubr.msk.f32.mxu1 %vm412_vm1, %v205_v13 }
 0x211   :  { %4247 = vmatpush3.bf16.xpose.msk.msra.mxu1 %vm5010_vm2, %v4242_v11 }
 0x212   :  { %v4248_v16 = vpack.c.bf16 %v4483_v14, %v4482_v15 }
 0x213   :  { %v207_v17 = vpop.permute.xlu1 %206  ;;  %v215_v18 = vpop.permute.xlu0 %214 }
 0x214   :  { %4250 = vmatprep.subr.msk.bf16.mxu1 %vm5010_vm2, %v4248_v16 }
 0x217   :  { %v213_v19 = vpop.permute.xlu1 %212  ;;  %v4486_v20 = vpop.permute.xlu0 %4485 }
 0x218   :  { %3986 = vmatmul.mubr.msk.f32.vlgmr.msra.gmra.mrb[2].mxu1 %vm412_vm1, %v207_v17  ;;  %v4488_v21 = vunpack.i.h.bf16 %v4486_v20  ;;  %v4487_v22 = vunpack.i.l.bf16 %v4486_v20 }
 0x219   :  { %4253 = vmatpush3.bf16.xpose.msk.msra.mxu1 %vm5010_vm2, %v4248_v16  ;;  %3992 = vmatprep.mubr.msk.f32.mxu1 %vm412_vm1, %v213_v19 }
 0x21a   :  { %v4254_v23 = vpack.c.bf16 %v4488_v21, %v4487_v22 }
 0x21b   :  { %v221_v24 = vpop.permute.xlu1 %220 }
 0x21c   :  { %v223_v25 = vpop.permute.xlu0 %222  ;;  %4256 = vmatprep.subr.msk.bf16.mxu1 %vm5010_vm2, %v4254_v23 }
 0x21f   :  { %v4491_v26 = vpop.permute.xlu1 %4490 }
 0x220   :  { %v4493_v27 = vunpack.i.h.bf16 %v4491_v26  ;;  %v4492_v28 = vunpack.i.l.bf16 %v4491_v26  ;;  %v4496_v29 = vpop.permute.xlu0 %4495  ;;  %3993 = vmatmul.mubr.msk.f32.vlgmr.msra.gmra.mrb[4].mxu1 %vm412_vm1, %v215_v18 }
 0x221   :  { %v4498_v30 = vunpack.i.h.bf16 %v4496_v29  ;;  %v4497_v31 = vunpack.i.l.bf16 %v4496_v29  ;;  %4259 = vmatpush3.bf16.xpose.msk.msra.mxu1 %vm5010_vm2, %v4254_v23  ;;  %3999 = vmatprep.mubr.msk.f32.mxu1 %vm412_vm1, %v221_v24 }
 0x222   :  { %v4260_v32 = vpack.c.bf16 %v4493_v27, %v4492_v28 }
 0x223   :  { %v4266_v33 = vpack.c.bf16 %v4498_v30, %v4497_v31  ;;  %v229_v34 = vpop.permute.xlu1 %228 }
 0x224   :  { %v237_v35 = vpop.permute.xlu0 %236  ;;  %4262 = vmatprep.subr.msk.bf16.mxu1 %vm5010_vm2, %v4260_v32 }
 0x225   :  { %4268 = vmatprep.subr.msk.bf16.mxu0 %vm5010_vm2, %v4266_v33  ;;  %4013 = vmatprep.mubr.msk.f32.mxu0 %vm412_vm1, %v237_v35 }
 0x226   :  { %4271 = vmatpush3.bf16.xpose.msk.msra.mxu0 %vm5010_vm2, %v4266_v33 }
 0x227   :  { %v231_v36 = vpop.permute.xlu1 %230 }
 0x228   :  { %v4501_v37 = vpop.permute.xlu0 %4500  ;;  %4000 = vmatmul.mubr.msk.f32.vlgmr.msra.gmra.mrb[6].mxu1 %vm412_vm1, %v223_v25 }
 0x229   :  { %v4503_v38 = vunpack.i.h.bf16 %v4501_v37  ;;  %v4502_v39 = vunpack.i.l.bf16 %v4501_v37  ;;  %4265 = vmatpush3.bf16.xpose.msk.msra.mxu1 %vm5010_vm2, %v4260_v32  ;;  %4006 = vmatprep.mubr.msk.f32.mxu1 %vm412_vm1, %v229_v34 }
 0x22b   :  { %v4272_v40 = vpack.c.bf16 %v4503_v38, %v4502_v39  ;;  %v4506_v41 = vpop.permute.xlu1 %4505 }
 0x22c   :  { %v4508_v42 = vunpack.i.h.bf16 %v4506_v41  ;;  %v4507_v43 = vunpack.i.l.bf16 %v4506_v41  ;;  %v239_v44 = vpop.permute.xlu0 %238 }
 0x22d   :  { %4014 = vmatmul.mubr.msk.f32.vlgmr.msra.gmra.mrb[8].mxu0 %vm412_vm1, %v239_v44  ;;  %4274 = vmatprep.subr.msk.bf16.mxu1 %vm5010_vm2, %v4272_v40 }
 0x22e   :  { %v4278_v45 = vpack.c.bf16 %v4508_v42, %v4507_v43 }
 0x22f   :  { %v245_v46 = vpop.permute.xlu1 %244 }
 0x230   :  { %v247_v48 = vpop.permute.xlu0 %246  ;;  %4007 = vmatmul.mubr.msk.f32.vlgmr.msra.gmra.mrb[8].mxu1 %vm412_vm1, %v231_v36  ;;  %4280 = vmatprep.subr.msk.bf16.mxu0 %vm5010_vm2, %v4278_v45 }
 0x231   :  { %4277 = vmatpush3.bf16.xpose.msk.msra.mxu1 %vm5010_vm2, %v4272_v40  ;;  %4020 = vmatprep.mubr.msk.f32.mxu1 %vm412_vm1, %v245_v46 }
 0x232   :  { %4283 = vmatpush3.bf16.xpose.msk.msra.mxu0 %vm5010_vm2, %v4278_v45  ;;  %4285 = vmatprep.subr.bf16.mxu1 %v4990_v47 }
 0x233   :  { %v253_v50 = vpop.permute.xlu1 %252 }
 0x234   :  { %v255_v51 = vpop.permute.xlu0 %254  ;;  %4027 = vmatprep.mubr.msk.f32.mxu0 %vm412_vm1, %v253_v50 }
 0x237   :  { %v4511_v53 = vpop.permute.xlu1 %4510 }
 0x238   :  { %v4516_v54 = vpop.permute.xlu0 %4515  ;;  %4021 = vmatmul.mubr.msk.f32.vlgmr.msra.gmra.mrb[10].mxu1 %vm412_vm1, %v247_v48  ;;  %4585 = vrot.lane.b32.xlu0 %v4511_v53, %s4890_s13 }
 0x239   :  { %4028 = vmatmul.mubr.msk.f32.vlgmr.msra.gmra.mrb[10].mxu0 %vm412_vm1, %v255_v51  ;;  %4287 = vmatpush3.bf16.msra.mxu1 %v4990_v47 }
 0x23a   :  { %4590 = vrot.lane.b32.xlu1 %v4516_v54, %s4890_s13 }
 0x23b   :  { %v5115_v55 = vpop.permute.xlu1 %4520 }
 0x23c   :  { %v5117_v56 = vpop.permute.xlu0 %4525 }
 0x23f   :  { %v5121_v57 = vpop.permute.xlu1 %4530 }
 0x240   :  { %v5123_v58 = vpop.permute.xlu0 %4535 }
 0x243   :  { %v5125_v59 = vpop.permute.xlu1 %4540 }
 0x244   :  { %v4551_v60 = vpop.permute.xlu0 %4550 }
 0x245   :  { %v4553_v61 = vunpack.i.h.bf16 %v4551_v60  ;;  %v4552_v63 = vunpack.i.l.bf16 %v4551_v60 }
 0x247   :  { %v4546_v0 = vpop.permute.xlu1 %4545  ;;  %v4292_v1 = vpack.c.bf16 %v4553_v61, %v4552_v63  ;;  %v5202_v63 = vmul.f32 0.35355338, %v4998_v49 }
 0x248   :  { %v4548_v47 = vunpack.i.h.bf16 %v4546_v0  ;;  %v4547_v2 = vunpack.i.l.bf16 %v4546_v0  ;;  %v5153_v23 = vpop.permute.xlu0 %4565 }
 0x249   :  { %4293 = vmatprep.subr.bf16.mxu0 %v4292_v1 }
 0x24a   :  { %4295 = vmatpush3.bf16.msra.mxu0 %v4292_v1  ;;  %v5127_v3 = vpack.c.bf16 %v4548_v47, %v4547_v2 }
 0x24b   :  { %v5129_v4 = vpop.permute.xlu1 %4555 }
 0x24c   :  { %4289 = vmatprep.subr.bf16.mxu1 %v5127_v3  ;;  %v5171_v32 = vpop.permute.xlu0 %4575  ;;  %v4558_v54 = vunpack.i.h.bf16 %v5129_v4  ;;  %v4557_v60 = vunpack.i.l.bf16 %v5129_v4 }
 0x24e   :  { %v4296_v2 = vpack.c.bf16 %v4558_v54, %v4557_v60 }
 0x24f   :  { %v4561_v5 = vpop.permute.xlu1 %4560 }
 0x250   :  { %v4563_v8 = vunpack.i.h.bf16 %v4561_v5  ;;  %v4562_v9 = vunpack.i.l.bf16 %v4561_v5 }
 0x252   :  { %v5132_v10 = vpack.c.bf16 %v4563_v8, %v4562_v9  ;;  %v4568_v8 = vunpack.i.h.bf16 %v5153_v23  ;;  %v4567_v9 = vunpack.i.l.bf16 %v5153_v23 }
 0x253   :  { %v5157_v25 = vpop.permute.xlu1 %4570 }
 0x254   :  { %4301 = vmatprep.subr.bf16.mxu0 %v5132_v10 }
 0x257   :  { %v5167_v30 = vpop.permute.xlu1 %4580 }
 0x284   :  { %v3980_v11 = vpop.f32.mrb[0].mxu1 }
 0x285   :  { %v487_v12 = vpop.f32.mrb[1].mxu1  ;;  %v1109_v13 = vsel %vm1105_vm3, %v3980_v11, -inf }
 0x286   :  { %1110 = vmax.xlane.f32.xlu1 %v1109_v13  ;;  %v1106_v14 = vsel %vm1105_vm3, %v487_v12, -inf }
 0x287   :  { %1107 = vmax.xlane.f32.xlu0 %v1106_v14 }
 0x2aa   :  { %v5177_v35 = vpop.permute.xlu0 %4585 }
 0x2ac   :  { %v5175_v34 = vpop.permute.xlu1 %4590 }
 0x2eb   :  { %v5137_v15 = vpop.f32.mrb[2].mxu1 }
 0x2ec   :  { %v5139_v16 = vpop.f32.mrb[3].mxu1  ;;  %v1115_v17 = vsel %vm1105_vm3, %v5137_v15, -inf }
 0x2ed   :  { %1116 = vmax.xlane.f32.xlu1 %v1115_v17  ;;  %v1112_v18 = vsel %vm1105_vm3, %v5139_v16, -inf }
 0x2ee   :  { %1113 = vmax.xlane.f32.xlu0 %v1112_v18 }
 0x2f3   :  { %v5145_v19 = vpop.f32.mrb[4].mxu1 }
 0x2f4   :  { %v5147_v20 = vpop.f32.mrb[5].mxu1  ;;  %v1121_v33 = vsel %vm1105_vm3, %v5145_v19, -inf }
 0x2f5   :  { %v1118_v46 = vsel %vm1105_vm3, %v5147_v20, -inf }
 0x2fb   :  { %v5149_v21 = vpop.f32.mrb[6].mxu1 }
 0x2fc   :  { %v5151_v22 = vpop.f32.mrb[7].mxu1  ;;  %v1127_v53 = vsel %vm1105_vm3, %v5149_v21, -inf }
 0x2fd   :  { %v1124_v61 = vsel %vm1105_vm3, %v5151_v22, -inf }
 0x300   :  { %v5155_v24 = vpop.f32.mrb[8].mxu0 }
 0x301   :  { %v5159_v26 = vpop.f32.mrb[9].mxu0  ;;  %v1139_v27 = vsel %vm1105_vm3, %v5155_v24, -inf }
 0x302   :  { %1140 = vmax.xlane.f32.xlu1 %v1139_v27  ;;  %v1136_v31 = vsel %vm1105_vm3, %v5159_v26, -inf }
 0x303   :  { %v5163_v28 = vpop.f32.mrb[8].mxu1 }
 0x304   :  { %v5165_v29 = vpop.f32.mrb[9].mxu1  ;;  %v1133_v47 = vsel %vm1105_vm3, %v5163_v28, -inf }
 0x305   :  { %v1130_v41 = vsel %vm1105_vm3, %v5165_v29, -inf }
 0x306   :  { %1137 = vmax.xlane.f32.xlu1 %v1136_v31 }
 0x30a   :  { %1122 = vmax.xlane.f32.xlu1 %v1121_v33 }
 0x30b   :  { %v5179_v36 = vpop.f32.mrb[10].mxu1 }
 0x30c   :  { %v5181_v37 = vpop.f32.mrb[10].mxu0  ;;  %v5183_v38 = vpop.f32.mrb[11].mxu1  ;;  %v1145_v49 = vsel %vm1105_vm3, %v5179_v36, -inf }
 0x30d   :  { %v5185_v39 = vpop.f32.mrb[11].mxu0  ;;  %v1151_v40 = vsel %vm1105_vm3, %v5181_v37, -inf  ;;  %v1142_v4 = vsel %vm1105_vm3, %v5183_v38, -inf }
 0x30e   :  { %1152 = vmax.xlane.f32.xlu0 %v1151_v40  ;;  %1131 = vmax.xlane.f32.xlu1 %v1130_v41  ;;  %v1148_v51 = vsel %vm1105_vm3, %v5185_v39, -inf }
 0x312   :  { %1119 = vmax.xlane.f32.xlu0 %v1118_v46 }
 0x313   :  { %v1111_v42 = vpop.xlane.xlu1 %1110 }
 0x314   :  { %v1155_v43 = vsub.f32 %v3980_v11, %v1111_v42  ;;  %v1108_v44 = vpop.xlane.xlu0 %1107 }
 0x315   :  { %v1154_v45 = vsub.f32 %v487_v12, %v1108_v44 }
 0x316   :  { %v1172_v48 = vmul.f32 1.442695, %v1155_v43  ;;  %1149 = vmax.xlane.f32.xlu0 %v1148_v51 }
 0x317   :  { %v1170_v50 = vmul.f32 1.442695, %v1154_v45 }
 0x319   :  { %4654 = vpow2.f32 %v1170_v50 }
 0x31a   :  { %4656 = vpow2.f32 %v1172_v48  ;;  %1128 = vmax.xlane.f32.xlu0 %v1127_v53 }
 0x31e   :  { %1125 = vmax.xlane.f32.xlu0 %v1124_v61 }
 0x31f   :  { %208 = vrot.lane.b32.xlu1 %v5202_v63, %s4885_s8 }
 0x322   :  { %1134 = vmax.xlane.f32.xlu0 %v1133_v47 }
 0x323   :  { %v5204_v0 = vpop.eup %4654 }
 0x324   :  { %v5208_v1 = vpop.eup %4656  ;;  %4034 = vmatprep.mubr.msk.f32.mxu1 %vm1105_vm3, %v5204_v0 }
 0x325   :  { %4035 = vmatmul.mubr.msk.f32.vlgmr.msra.gmra.mrb[12].mxu1 %vm1105_vm3, %v5208_v1 }
 0x326   :  { %4291 = vmatpush3.bf16.msra.mxu1 %v5127_v3 }
 0x327   :  { %4297 = vmatprep.subr.bf16.mxu1 %v4296_v2 }
 0x338   :  { %4595 = vrot.lane.b32.xlu0 %v5115_v55, %s4890_s13  ;;  %v5236_v55 = vmul.f32 0.35355338, %v5000_v52 }
 0x343   :  { %1146 = vmax.xlane.f32.xlu1 %v1145_v49  ;;  %v4578_v49 = vunpack.i.h.bf16 %v5171_v32 }
 0x354   :  { %4600 = vrot.lane.b32.xlu1 %v5117_v56, %s4890_s13 }
 0x357   :  { %1143 = vmax.xlane.f32.xlu0 %v1142_v4  ;;  %v4577_v4 = vunpack.i.l.bf16 %v5171_v32 }
 0x358   :  { %216 = vrot.lane.b32.xlu1 %v5202_v63, %s4887_s10 }
 0x359   :  { %v4312_v32 = vpack.c.bf16 %v4578_v49, %v4577_v4 }
 0x35c   :  { %224 = vrot.lane.b32.xlu1 %v5202_v63, %s4884_s2 }
 0x360   :  { %4610 = vrot.lane.b32.xlu1 %v5123_v58, %s4890_s13 }
 0x364   :  { %232 = vrot.lane.b32.xlu1 %v5202_v63, %s4886_s9 }
 0x368   :  { %240 = vrot.lane.b32.xlu1 %v5202_v63, %s4889_s12 }
 0x36c   :  { %248 = vrot.lane.b32.xlu1 %v5202_v63, %s4888_s11 }
 0x36d   :  { %210 = vrot.lane.b32.xlu0 %v5236_v55, %s4885_s8 }
 0x370   :  { %256 = vrot.lane.b32.xlu1 %v5202_v63, %s4891_s14 }
 0x371   :  { %4605 = vrot.lane.b32.xlu0 %v5121_v57, %s4890_s13 }
 0x374   :  { %4625 = vrot.lane.b32.xlu1 %v5067_v6, %s4887_s10 }
 0x375   :  { %218 = vrot.lane.b32.xlu0 %v5236_v55, %s4887_s10 }
 0x378   :  { %4630 = vrot.lane.b32.xlu1 %v5067_v6, %s4884_s2 }
 0x379   :  { %226 = vrot.lane.b32.xlu0 %v5236_v55, %s4884_s2 }
 0x37a   :  { %v1117_v52 = vpop.xlane.xlu1 %1116 }
 0x37b   :  { %v1157_v56 = vsub.f32 %v5137_v15, %v1117_v52  ;;  %v1114_v58 = vpop.xlane.xlu0 %1113 }
 0x37c   :  { %v1156_v3 = vsub.f32 %v5139_v16, %v1114_v58  ;;  %4640 = vrot.lane.b32.xlu1 %v5067_v6, %s4889_s12 }
 0x37d   :  { %v1176_v57 = vmul.f32 1.442695, %v1157_v56  ;;  %4615 = vrot.lane.b32.xlu0 %v5125_v59, %s4890_s13  ;;  %v5276_v59 = vpack.c.bf16 %v4568_v8, %v4567_v9  ;;  %v4582_v56 = vunpack.i.l.bf16 %v5167_v30 }
 0x37e   :  { %v1174_v5 = vmul.f32 1.442695, %v1156_v3  ;;  %v4588_v3 = vunpack.i.h.bf16 %v5177_v35 }
 0x380   :  { %4658 = vpow2.f32 %v1174_v5 }
 0x381   :  { %4660 = vpow2.f32 %v1176_v57  ;;  %234 = vrot.lane.b32.xlu0 %v5236_v55, %s4886_s9  ;;  %v4587_v57 = vunpack.i.l.bf16 %v5177_v35 }
 0x383   :  { %v4322_v9 = vpack.c.bf16 %v4588_v3, %v4587_v57 }
 0x385   :  { %242 = vrot.lane.b32.xlu0 %v5236_v55, %s4889_s12 }
 0x389   :  { %250 = vrot.lane.b32.xlu0 %v5236_v55, %s4888_s11 }
 0x38a   :  { %v5268_v11 = vpop.eup %4658 }
 0x38b   :  { %v5270_v12 = vpop.eup %4660  ;;  %4041 = vmatprep.mubr.msk.f32.mxu1 %vm1105_vm3, %v5268_v11 }
 0x38c   :  { %4042 = vmatmul.mubr.msk.f32.vlgmr.msra.gmra.mrb[14].mxu1 %vm1105_vm3, %v5270_v12 }
 0x38d   :  { %4299 = vmatpush3.bf16.msra.mxu1 %v4296_v2  ;;  %258 = vrot.lane.b32.xlu0 %v5236_v55, %s4891_s14 }
 0x38e   :  { %4305 = vmatprep.subr.bf16.mxu1 %v5276_v59 }
 0x38f   :  { %v1141_v13 = vpop.xlane.xlu1 %1140 }
 0x391   :  { %4620 = vrot.lane.b32.xlu0 %v5067_v6, %s4885_s8 }
 0x393   :  { %v1138_v14 = vpop.xlane.xlu1 %1137 }
 0x394   :  { %v1164_v45 = vsub.f32 %v5159_v26, %v1138_v14 }
 0x395   :  { %4635 = vrot.lane.b32.xlu0 %v5067_v6, %s4886_s9 }
 0x396   :  { %v1190_v53 = vmul.f32 1.442695, %v1164_v45 }
 0x397   :  { %v1123_v15 = vpop.xlane.xlu1 %1122 }
 0x398   :  { %v1159_v18 = vsub.f32 %v5145_v19, %v1123_v15  ;;  %v4573_v19 = vunpack.i.h.bf16 %v5157_v25 }
 0x39a   :  { %v1180_v33 = vmul.f32 1.442695, %v1159_v18 }
 0x39b   :  { %v1153_v16 = vpop.xlane.xlu0 %1152  ;;  %v1132_v17 = vpop.xlane.xlu1 %1131 }
 0x39c   :  { %v1162_v23 = vsub.f32 %v5165_v29, %v1132_v17  ;;  %v4572_v29 = vunpack.i.l.bf16 %v5157_v25  ;;  %v1169_v47 = vsub.f32 %v5181_v37, %v1153_v16 }
 0x39e   :  { %v1186_v40 = vmul.f32 1.442695, %v1162_v23 }
 0x39f   :  { %v1120_v27 = vpop.xlane.xlu0 %1119  ;;  %v209_v14 = vpop.permute.xlu1 %208 }
 0x3a0   :  { %v1158_v31 = vsub.f32 %v5147_v20, %v1120_v27  ;;  %v1165_v20 = vsub.f32 %v5155_v24, %v1141_v13  ;;  %v4308_v24 = vpack.c.bf16 %v4573_v19, %v4572_v29 }
 0x3a2   :  { %v1178_v41 = vmul.f32 1.442695, %v1158_v31  ;;  %v1192_v25 = vmul.f32 1.442695, %v1165_v20 }
 0x3a3   :  { %v1150_v42 = vpop.xlane.xlu0 %1149 }
 0x3a4   :  { %4662 = vpow2.f32 %v1178_v41 }
 0x3a5   :  { %4664 = vpow2.f32 %v1180_v33 }
 0x3a6   :  { %4666 = vpow2.f32 %v1186_v40 }
 0x3a7   :  { %v1129_v43 = vpop.xlane.xlu0 %1128 }
 0x3a8   :  { %v1161_v44 = vsub.f32 %v5149_v21, %v1129_v43  ;;  %v1168_v21 = vsub.f32 %v5185_v39, %v1150_v42 }
 0x3aa   :  { %v1184_v50 = vmul.f32 1.442695, %v1161_v44  ;;  %v1198_v2 = vmul.f32 1.442695, %v1168_v21 }
 0x3ab   :  { %v1126_v46 = vpop.xlane.xlu0 %1125 }
 0x3ac   :  { %v1160_v48 = vsub.f32 %v5151_v22, %v1126_v46 }
 0x3ae   :  { %v5294_v51 = vpop.eup %4662  ;;  %v1182_v54 = vmul.f32 1.442695, %v1160_v48 }
 0x3af   :  { %v5296_v60 = vpop.eup %4664  ;;  %4048 = vmatprep.mubr.msk.f32.mxu0 %vm1105_vm3, %v5294_v51  ;;  %v1135_v26 = vpop.xlane.xlu0 %1134 }
 0x3b0   :  { %v5301_v61 = vpop.eup %4666  ;;  %4668 = vpow2.f32 %v1182_v54  ;;  %v1163_v22 = vsub.f32 %v5163_v28, %v1135_v26  ;;  %4049 = vmatmul.mubr.msk.f32.vlgmr.msra.gmra.mrb[12].mxu0 %vm1105_vm3, %v5296_v60  ;;  %v1200_v28 = vmul.f32 1.442695, %v1169_v47 }
 0x3b1   :  { %4670 = vpow2.f32 %v1184_v50  ;;  %4303 = vmatpush3.bf16.msra.mxu0 %v5132_v10  ;;  %4062 = vmatprep.mubr.msk.f32.mxu0 %vm1105_vm3, %v5301_v61  ;;  %v4583_v10 = vunpack.i.h.bf16 %v5167_v30  ;;  %v4592_v50 = vunpack.i.l.bf16 %v5175_v34 }
 0x3b2   :  { %4672 = vpow2.f32 %v1190_v53  ;;  %v1188_v39 = vmul.f32 1.442695, %v1163_v22  ;;  %4309 = vmatprep.subr.bf16.mxu0 %v4308_v24 }
 0x3b3   :  { %v4316_v8 = vpack.c.bf16 %v4583_v10, %v4582_v56 }
 0x3b4   :  { %4674 = vpow2.f32 %v1188_v39 }
 0x3b5   :  { %4676 = vpow2.f32 %v1192_v25 }
 0x3b6   :  { %4678 = vpow2.f32 %v1198_v2 }
 0x3b7   :  { %4680 = vpow2.f32 %v1200_v28 }
 0x3ba   :  { %v5312_v37 = vpop.eup %4668 }
 0x3bb   :  { %v5314_v52 = vpop.eup %4670  ;;  %4055 = vmatprep.mubr.msk.f32.mxu1 %vm1105_vm3, %v5312_v37 }
 0x3bc   :  { %v5320_v58 = vpop.eup %4672  ;;  %4056 = vmatmul.mubr.msk.f32.vlgmr.msra.gmra.mrb[16].mxu1 %vm1105_vm3, %v5314_v52 }
 0x3bd   :  { %4307 = vmatpush3.bf16.msra.mxu1 %v5276_v59  ;;  %4069 = vmatprep.mubr.msk.f32.mxu1 %vm1105_vm3, %v5320_v58  ;;  %v4596_v59 = vpop.permute.xlu0 %4595 }
 0x3be   :  { %v5329_v5 = vpop.eup %4674  ;;  %4313 = vmatprep.subr.bf16.mxu1 %v4312_v32  ;;  %v4598_v15 = vunpack.i.h.bf16 %v4596_v59  ;;  %v4597_v16 = vunpack.i.l.bf16 %v4596_v59 }
 0x3bf   :  { %v5331_v30 = vpop.eup %4676  ;;  %4063 = vmatmul.mubr.msk.f32.vlgmr.msra.gmra.mrb[14].mxu0 %vm1105_vm3, %v5329_v5 }
 0x3c0   :  { %4311 = vmatpush3.bf16.msra.mxu0 %v4308_v24  ;;  %4070 = vmatmul.mubr.msk.f32.vlgmr.msra.gmra.mrb[18].mxu1 %vm1105_vm3, %v5331_v30  ;;  %v5337_v35 = vpop.eup %4678  ;;  %v4334_v17 = vpack.c.bf16 %v4598_v15, %v4597_v16 }
 0x3c1   :  { %4315 = vmatpush3.bf16.msra.mxu1 %v4312_v32  ;;  %4318 = vmatprep.subr.msk.bf16.mxu0 %vm5010_vm2, %v4316_v8  ;;  %v5345_v13 = vpop.eup %4680 }
 0x3c2   :  { %4083 = vmatprep.mubr.msk.f32.mxu1 %vm1105_vm3, %v5337_v35  ;;  %4324 = vmatprep.subr.msk.bf16.mxu1 %vm5010_vm2, %v4322_v9 }
 0x3c4   :  { %4084 = vmatmul.mubr.msk.f32.vlgmr.msra.gmra.mrb[20].mxu1 %vm1105_vm3, %v5345_v13 }
 0x3c5   :  { %4097 = vmatprep.mubr.msk.f32.mxu1 %vm412_vm1, %v209_v14 }
 0x3ca   :  { %4327 = vmatpush3.bf16.xpose.msk.msra.mxu1 %vm5010_vm2, %v4322_v9 }
 0x3cb   :  { %4336 = vmatprep.subr.msk.bf16.mxu1 %vm5010_vm2, %v4334_v17 }
 0x3d0   :  { %v1147_v18 = vpop.xlane.xlu1 %1146 }
 0x3d1   :  { %v1167_v33 = vsub.f32 %v5179_v36, %v1147_v18 }
 0x3d3   :  { %v1196_v42 = vmul.f32 1.442695, %v1167_v33 }
 0x3d4   :  { %v4601_v23 = vpop.permute.xlu1 %4600 }
 0x3d5   :  { %v4603_v39 = vunpack.i.h.bf16 %v4601_v23  ;;  %v4602_v2 = vunpack.i.l.bf16 %v4601_v23 }
 0x3d7   :  { %v4340_v56 = vpack.c.bf16 %v4603_v39, %v4602_v2 }
 0x3d8   :  { %v217_v27 = vpop.permute.xlu1 %216 }
 0x3dc   :  { %v225_v31 = vpop.permute.xlu1 %224 }
 0x3e0   :  { %v4611_v43 = vpop.permute.xlu1 %4610 }
 0x3e1   :  { %v4613_v57 = vunpack.i.h.bf16 %v4611_v43  ;;  %v4612_v32 = vunpack.i.l.bf16 %v4611_v43 }
 0x3e3   :  { %v4352_v9 = vpack.c.bf16 %v4613_v57, %v4612_v32 }
 0x3e4   :  { %v1144_v40 = vpop.xlane.xlu0 %1143  ;;  %v233_v46 = vpop.permute.xlu1 %232 }
 0x3e5   :  { %v1166_v41 = vsub.f32 %v5183_v38, %v1144_v40  ;;  %v4593_v38 = vunpack.i.h.bf16 %v5175_v34 }
 0x3e7   :  { %v1194_v44 = vmul.f32 1.442695, %v1166_v41  ;;  %v4328_v22 = vpack.c.bf16 %v4593_v38, %v4592_v50 }
 0x3e8   :  { %v211_v45 = vpop.permute.xlu0 %210  ;;  %v241_v53 = vpop.permute.xlu1 %240 }
 0x3e9   :  { %4682 = vpow2.f32 %v1194_v44  ;;  %4098 = vmatmul.mubr.msk.f32.vlgmr.msra.gmra.mrb[22].mxu1 %vm412_vm1, %v211_v45 }
 0x3ea   :  { %4684 = vpow2.f32 %v1196_v42  ;;  %4339 = vmatpush3.bf16.xpose.msk.msra.mxu1 %vm5010_vm2, %v4334_v17  ;;  %4111 = vmatprep.mubr.msk.f32.mxu1 %vm412_vm1, %v225_v31 }
 0x3ec   :  { %v4606_v19 = vpop.permute.xlu0 %4605  ;;  %v249_v25 = vpop.permute.xlu1 %248 }
 0x3ed   :  { %v4608_v29 = vunpack.i.h.bf16 %v4606_v19  ;;  %v4607_v36 = vunpack.i.l.bf16 %v4606_v19 }
 0x3ef   :  { %v4346_v48 = vpack.c.bf16 %v4608_v29, %v4607_v36 }
 0x3f0   :  { %v219_v20 = vpop.permute.xlu0 %218 }
 0x3f1   :  { %4348 = vmatprep.subr.msk.bf16.mxu1 %vm5010_vm2, %v4346_v48 }
 0x3f3   :  { %v5364_v54 = vpop.eup %4682 }
 0x3f4   :  { %v5366_v21 = vpop.eup %4684  ;;  %4076 = vmatprep.mubr.msk.f32.mxu0 %vm1105_vm3, %v5364_v54  ;;  %v227_v26 = vpop.permute.xlu0 %226 }
 0x3f5   :  { %4077 = vmatmul.mubr.msk.f32.vlgmr.msra.gmra.mrb[16].mxu0 %vm1105_vm3, %v5366_v21  ;;  %4112 = vmatmul.mubr.msk.f32.vlgmr.msra.gmra.mrb[24].mxu1 %vm412_vm1, %v227_v26 }
 0x3f6   :  { %4321 = vmatpush3.bf16.xpose.msk.msra.mxu0 %vm5010_vm2, %v4316_v8  ;;  %4351 = vmatpush3.bf16.xpose.msk.msra.mxu1 %vm5010_vm2, %v4346_v48 }
 0x3f7   :  { %4090 = vmatprep.mubr.msk.f32.mxu0 %vm412_vm1, %v5202_v63  ;;  %4330 = vmatprep.subr.msk.bf16.mxu0 %vm5010_vm2, %v4328_v22  ;;  %v257_v63 = vpop.permute.xlu1 %256 }
 0x3f8   :  { %v5370_v24 = vpop.f32.mrb[12].mxu1  ;;  %4125 = vmatprep.mubr.msk.f32.mxu1 %vm412_vm1, %v241_v53  ;;  %v4616_v47 = vpop.permute.xlu0 %4615 }
 0x3f9   :  { %v5379_v34 = vpop.f32.mrb[13].mxu1  ;;  %v4618_v28 = vunpack.i.h.bf16 %v4616_v47  ;;  %v4617_v49 = vunpack.i.l.bf16 %v4616_v47 }
 0x3fb   :  { %v4358_v4 = vpack.c.bf16 %v4618_v28, %v4617_v49 }
 0x3fc   :  { %v235_v10 = vpop.permute.xlu0 %234 }
 0x3fd   :  { %4091 = vmatmul.mubr.msk.f32.vlgmr.msra.gmra.mrb[18].mxu0 %vm412_vm1, %v5236_v55  ;;  %4360 = vmatprep.subr.msk.bf16.mxu1 %vm5010_vm2, %v4358_v4  ;;  %v4626_v55 = vpop.permute.xlu1 %4625 }
 0x3fe   :  { %4333 = vmatpush3.bf16.xpose.msk.msra.mxu0 %vm5010_vm2, %v4328_v22  ;;  %4104 = vmatprep.mubr.msk.f32.mxu0 %vm412_vm1, %v217_v27  ;;  %v4628_v31 = vunpack.i.h.bf16 %v4626_v55  ;;  %v4627_v33 = vunpack.i.l.bf16 %v4626_v55 }
 0x3ff   :  { %4342 = vmatprep.subr.msk.bf16.mxu0 %vm5010_vm2, %v4340_v56 }
 0x400   :  { %v243_v3 = vpop.permute.xlu0 %242  ;;  %v5414_v41 = vpack.c.bf16 %v4628_v31, %v4627_v33 }
 0x401   :  { %4126 = vmatmul.mubr.msk.f32.vlgmr.msra.gmra.mrb[26].mxu1 %vm412_vm1, %v243_v3  ;;  %v4631_v14 = vpop.permute.xlu1 %4630 }
 0x402   :  { %4363 = vmatpush3.bf16.xpose.msk.msra.mxu1 %vm5010_vm2, %v4358_v4  ;;  %4139 = vmatprep.mubr.msk.f32.mxu1 %vm412_vm1, %v257_v63  ;;  %v4633_v16 = vunpack.i.h.bf16 %v4631_v14  ;;  %v4632_v17 = vunpack.i.l.bf16 %v4631_v14 }
 0x404   :  { %v251_v8 = vpop.permute.xlu0 %250  ;;  %v5411_v40 = vpack.c.bf16 %v4633_v16, %v4632_v17 }
 0x405   :  { %4105 = vmatmul.mubr.msk.f32.vlgmr.msra.gmra.mrb[20].mxu0 %vm412_vm1, %v219_v20 }
 0x406   :  { %4345 = vmatpush3.bf16.xpose.msk.msra.mxu0 %vm5010_vm2, %v4340_v56  ;;  %4118 = vmatprep.mubr.msk.f32.mxu0 %vm412_vm1, %v233_v46 }
 0x407   :  { %4354 = vmatprep.subr.msk.bf16.mxu0 %vm5010_vm2, %v4352_v9 }
 0x408   :  { %v259_v59 = vpop.permute.xlu0 %258 }
 0x409   :  { %4140 = vmatmul.mubr.msk.f32.vlgmr.msra.gmra.mrb[28].mxu1 %vm412_vm1, %v259_v59 }
 0x40c   :  { %v4621_v15 = vpop.permute.xlu0 %4620 }
 0x40d   :  { %4119 = vmatmul.mubr.msk.f32.vlgmr.msra.gmra.mrb[22].mxu0 %vm412_vm1, %v235_v10  ;;  %v4623_v18 = vunpack.i.h.bf16 %v4621_v15  ;;  %v4622_v23 = vunpack.i.l.bf16 %v4621_v15 }
 0x40e   :  { %4357 = vmatpush3.bf16.xpose.msk.msra.mxu0 %vm5010_vm2, %v4352_v9  ;;  %4132 = vmatprep.mubr.msk.f32.mxu0 %vm412_vm1, %v249_v25 }
 0x40f   :  { %v4368_v27 = vpack.c.bf16 %v4623_v18, %v4622_v23  ;;  %4365 = vmatprep.subr.bf16.mxu0 %v5069_v7 }
 0x411   :  { %4369 = vmatprep.subr.bf16.mxu1 %v4368_v27 }
 0x412   :  { %4371 = vmatpush3.bf16.msra.mxu1 %v4368_v27 }
 0x413   :  { %4377 = vmatprep.subr.bf16.mxu1 %v5411_v40 }
 0x415   :  { %4133 = vmatmul.mubr.msk.f32.vlgmr.msra.gmra.mrb[24].mxu0 %vm412_vm1, %v251_v8 }
 0x416   :  { %4367 = vmatpush3.bf16.msra.mxu0 %v5069_v7 }
 0x417   :  { %4373 = vmatprep.subr.bf16.mxu0 %v5414_v41 }
 0x45f   :  { %v5419_v62 = vpop.f32.mrb[14].mxu1 }
 0x460   :  { %v5421_v42 = vpop.f32.mrb[15].mxu1 }
 0x483   :  { %v5423_v43 = vpop.f32.mrb[12].mxu0 }
 0x484   :  { %v5425_v44 = vpop.f32.mrb[13].mxu0 }
 0x48f   :  { %v5427_v45 = vpop.f32.mrb[16].mxu1 }
 0x490   :  { %v5429_v46 = vpop.f32.mrb[17].mxu1 }
 0x492   :  { %v5431_v19 = vpop.f32.mrb[14].mxu0 }
 0x493   :  { %v5433_v29 = vpop.f32.mrb[15].mxu0  ;;  %v5435_v36 = vpop.f32.mrb[18].mxu1 }
 0x494   :  { %v5437_v7 = vpop.f32.mrb[19].mxu1 }
 0x497   :  { %v5439_v48 = vpop.f32.mrb[20].mxu1 }
 0x498   :  { %v5441_v20 = vpop.f32.mrb[21].mxu1 }
 0x4bc   :  { %v5443_v38 = vpop.f32.mrb[22].mxu1 }
 0x4bd   :  { %v5445_v50 = vpop.f32.mrb[23].mxu1  ;;  %v2710_v53 = vsel %vm1105_vm3, %v5443_v38, -inf }
 0x4be   :  { %2711 = vmax.xlane.f32.xlu1 %v2710_v53  ;;  %v2707_v26 = vsel %vm1105_vm3, %v5445_v50, -inf }
 0x4bf   :  { %2708 = vmax.xlane.f32.xlu0 %v2707_v26 }
 0x4c8   :  { %v5451_v22 = vpop.f32.mrb[16].mxu0  ;;  %v5453_v25 = vpop.f32.mrb[24].mxu1 }
 0x4c9   :  { %v5455_v47 = vpop.f32.mrb[17].mxu0  ;;  %v5457_v39 = vpop.f32.mrb[25].mxu1  ;;  %v2722_v3 = vsel %vm1105_vm3, %v5453_v25, -inf }
 0x4ca   :  { %v2719_v56 = vsel %vm1105_vm3, %v5457_v39, -inf }
 0x4d0   :  { %v5459_v2 = vpop.f32.mrb[18].mxu0 }
 0x4d1   :  { %v5461_v28 = vpop.f32.mrb[19].mxu0  ;;  %v2704_v49 = vsel %vm1105_vm3, %v5459_v2, -inf }
 0x4d2   :  { %2705 = vmax.xlane.f32.xlu0 %v2704_v49  ;;  %v2701_v4 = vsel %vm1105_vm3, %v5461_v28, -inf }
 0x4d3   :  { %2702 = vmax.xlane.f32.xlu1 %v2701_v4  ;;  %v1211_v4 = vsel %vm1105_vm3, %v5270_v12, 0.0  ;;  %v1223_v12 = vsel %vm1105_vm3, %v5314_v52, 0.0  ;;  %v1247_v52 = vsel %vm1105_vm3, %v5345_v13, 0.0 }
 0x4d4   :  { %v5467_v10 = vpop.f32.mrb[26].mxu1 }
 0x4d5   :  { %v5471_v63 = vpop.f32.mrb[27].mxu1  ;;  %v2734_v14 = vsel %vm1105_vm3, %v5467_v10, -inf }
 0x4d6   :  { %2720 = vmax.xlane.f32.xlu0 %v2719_v56  ;;  %v2731_v15 = vsel %vm1105_vm3, %v5471_v63, -inf  ;;  %v1208_v56 = vsel %vm1105_vm3, %v5268_v11, 0.0  ;;  %v1232_v11 = vsel %vm1105_vm3, %v5320_v58, 0.0  ;;  %v1244_v58 = vsel %vm1105_vm3, %v5337_v35, 0.0 }
 0x4d7   :  { %2723 = vmax.xlane.f32.xlu1 %v2722_v3  ;;  %v1220_v3 = vsel %vm1105_vm3, %v5312_v37, 0.0  ;;  %v1229_v37 = vsel %vm1105_vm3, %v5329_v5, 0.0  ;;  %v1202_v5 = vsel %vm1105_vm3, %v5204_v0, 0.0 }
 0x4d8   :  { %v5475_v57 = vpop.f32.mrb[20].mxu0 }
 0x4d9   :  { %v5477_v32 = vpop.f32.mrb[21].mxu0  ;;  %v2716_v55 = vsel %vm1105_vm3, %v5475_v57, -inf }
 0x4da   :  { %v2713_v8 = vsel %vm1105_vm3, %v5477_v32, -inf }
 0x4db   :  { %2717 = vmax.xlane.f32.xlu1 %v2716_v55  ;;  %2714 = vmax.xlane.f32.xlu0 %v2713_v8  ;;  %v1214_v55 = vsel %vm1105_vm3, %v5294_v51, 0.0  ;;  %v1226_v8 = vsel %vm1105_vm3, %v5301_v61, 0.0  ;;  %v1235_v51 = vsel %vm1105_vm3, %v5331_v30, 0.0  ;;  %v1238_v61 = vsel %vm1105_vm3, %v5364_v54, 0.0  ;;  %v4641_v30 = vpop.permute.xlu1 %4640 }
 0x4dc   :  { %v5483_v9 = vpop.f32.mrb[28].mxu1  ;;  %v4643_v13 = vunpack.i.h.bf16 %v4641_v30  ;;  %v4642_v35 = vunpack.i.l.bf16 %v4641_v30 }
 0x4dd   :  { %v5485_v59 = vpop.f32.mrb[29].mxu1  ;;  %v2746_v27 = vsel %vm1105_vm3, %v5483_v9, -inf }
 0x4de   :  { %v2743_v31 = vsel %vm1105_vm3, %v5485_v59, -inf }
 0x4df   :  { %2735 = vmax.xlane.f32.xlu1 %v2734_v14  ;;  %2732 = vmax.xlane.f32.xlu0 %v2731_v15  ;;  %v4636_v14 = vpop.permute.xlu0 %4635 }
 0x4e0   :  { %v5491_v16 = vpop.f32.mrb[22].mxu0 }
 0x4e1   :  { %v5493_v17 = vpop.f32.mrb[23].mxu0  ;;  %v2728_v18 = vsel %vm1105_vm3, %v5491_v16, -inf }
 0x4e2   :  { %v2725_v23 = vsel %vm1105_vm3, %v5493_v17, -inf }
 0x4e3   :  { %2729 = vmax.xlane.f32.xlu1 %v2728_v18  ;;  %2726 = vmax.xlane.f32.xlu0 %v2725_v23 }
 0x4e7   :  { %2747 = vmax.xlane.f32.xlu1 %v2746_v27  ;;  %2744 = vmax.xlane.f32.xlu0 %v2743_v31 }
 0x4e8   :  { %v5503_v33 = vpop.f32.mrb[24].mxu0 }
 0x4e9   :  { %v5505_v53 = vpop.f32.mrb[25].mxu0  ;;  %v2740_v26 = vsel %vm1105_vm3, %v5503_v33, -inf }
 0x4ea   :  { %v2737_v49 = vsel %vm1105_vm3, %v5505_v53, -inf }
 0x4eb   :  { %2741 = vmax.xlane.f32.xlu1 %v2740_v26  ;;  %2738 = vmax.xlane.f32.xlu0 %v2737_v49 }
 0x4fc   :  { %4650 = vrot.lane.b32.xlu1 %v5067_v6, %s4891_s14 }
 0x501   :  { %4645 = vrot.lane.b32.xlu0 %v5067_v6, %s4888_s11  ;;  %v1217_v6 = vsel %vm1105_vm3, %v5296_v60, 0.0  ;;  %v1241_v60 = vsel %vm1105_vm3, %v5366_v21, 0.0 }
 0x520   :  { %1212 = vadd.xlane.f32.xlu1 %v1211_v4  ;;  %1209 = vadd.xlane.f32.xlu0 %v1208_v56  ;;  %v4384_v4 = vpack.c.bf16 %v4643_v13, %v4642_v35 }
 0x524   :  { %1221 = vadd.xlane.f32.xlu1 %v1220_v3  ;;  %1215 = vadd.xlane.f32.xlu0 %v1214_v55 }
 0x528   :  { %1227 = vadd.xlane.f32.xlu1 %v1226_v8  ;;  %1218 = vadd.xlane.f32.xlu0 %v1217_v6 }
 0x52c   :  { %1233 = vadd.xlane.f32.xlu1 %v1232_v11  ;;  %1224 = vadd.xlane.f32.xlu0 %v1223_v12 }
 0x530   :  { %1236 = vadd.xlane.f32.xlu1 %v1235_v51  ;;  %1230 = vadd.xlane.f32.xlu0 %v1229_v37 }
 0x534   :  { %1242 = vadd.xlane.f32.xlu1 %v1241_v60  ;;  %1239 = vadd.xlane.f32.xlu0 %v1238_v61 }
 0x538   :  { %1248 = vadd.xlane.f32.xlu1 %v1247_v52  ;;  %1245 = vadd.xlane.f32.xlu0 %v1244_v58 }
 0x53c   :  { %1203 = vadd.xlane.f32.xlu1 %v1202_v5  ;;  %v4638_v5 = vunpack.i.h.bf16 %v4636_v14 }
 0x54b   :  { %v2712_v21 = vpop.xlane.xlu1 %2711 }
 0x54c   :  { %v2752_v15 = vsub.f32 %v5443_v38, %v2712_v21  ;;  %v2709_v54 = vpop.xlane.xlu0 %2708  ;;  %v4637_v21 = vunpack.i.l.bf16 %v4636_v14 }
 0x54d   :  { %v2751_v18 = vsub.f32 %v5445_v50, %v2709_v54 }
 0x54e   :  { %v2771_v23 = vmul.f32 1.442695, %v2752_v15  ;;  %v4380_v13 = vpack.c.bf16 %v4638_v5, %v4637_v21 }
 0x54f   :  { %v2769_v27 = vmul.f32 1.442695, %v2751_v18 }
 0x550   :  { %4686 = vpow2.f32 %v2771_v23 }
 0x551   :  { %4688 = vpow2.f32 %v2769_v27 }
 0x55a   :  { %v4687_v31 = vpop.eup %4686 }
 0x55b   :  { %v4689_v26 = vpop.eup %4688  ;;  %v2806_v49 = vsel %vm1105_vm3, %v4687_v31, 0.0 }
 0x55c   :  { %4153 = vmatprep.mubr.msk.f32.mxu1 %vm1105_vm3, %v4689_v26  ;;  %2807 = vadd.xlane.f32.xlu1 %v2806_v49  ;;  %v2803_v0 = vsel %vm1105_vm3, %v4689_v26, 0.0 }
 0x55d   :  { %4154 = vmatmul.mubr.msk.f32.vlgmr.msra.gmra.mrb[30].mxu1 %vm1105_vm3, %v4687_v31  ;;  %2804 = vadd.xlane.f32.xlu0 %v2803_v0 }
 0x55e   :  { %4379 = vmatpush3.bf16.msra.mxu1 %v5411_v40 }
 0x55f   :  { %v2706_v38 = vpop.xlane.xlu0 %2705  ;;  %4385 = vmatprep.subr.bf16.mxu1 %v4384_v4 }
 0x560   :  { %v2750_v50 = vsub.f32 %v5459_v2, %v2706_v38  ;;  %v2703_v56 = vpop.xlane.xlu1 %2702 }
 0x561   :  { %v2749_v3 = vsub.f32 %v5461_v28, %v2703_v56 }
 0x562   :  { %v2767_v55 = vmul.f32 1.442695, %v2750_v50 }
 0x563   :  { %v2765_v8 = vmul.f32 1.442695, %v2749_v3  ;;  %v2721_v6 = vpop.xlane.xlu0 %2720 }
 0x564   :  { %v2755_v11 = vsub.f32 %v5457_v39, %v2721_v6  ;;  %v2724_v12 = vpop.xlane.xlu1 %2723 }
 0x565   :  { %4690 = vpow2.f32 %v2765_v8  ;;  %v2756_v51 = vsub.f32 %v5453_v25, %v2724_v12 }
 0x566   :  { %4692 = vpow2.f32 %v2767_v55  ;;  %v2777_v37 = vmul.f32 1.442695, %v2755_v11 }
 0x567   :  { %v2779_v60 = vmul.f32 1.442695, %v2756_v51 }
 0x568   :  { %4694 = vpow2.f32 %v2777_v37  ;;  %v2718_v40 = vpop.xlane.xlu1 %2717  ;;  %v2715_v61 = vpop.xlane.xlu0 %2714 }
 0x569   :  { %4696 = vpow2.f32 %v2779_v60  ;;  %v2754_v2 = vsub.f32 %v5475_v57, %v2718_v40  ;;  %v2753_v28 = vsub.f32 %v5477_v32, %v2715_v61 }
 0x56b   :  { %v2775_v52 = vmul.f32 1.442695, %v2754_v2  ;;  %v2773_v58 = vmul.f32 1.442695, %v2753_v28 }
 0x56c   :  { %v2736_v30 = vpop.xlane.xlu1 %2735  ;;  %v2733_v39 = vpop.xlane.xlu0 %2732 }
 0x56d   :  { %4698 = vpow2.f32 %v2775_v52  ;;  %v2760_v25 = vsub.f32 %v5467_v10, %v2736_v30  ;;  %v2759_v15 = vsub.f32 %v5471_v63, %v2733_v39 }
 0x56e   :  { %4700 = vpow2.f32 %v2773_v58 }
 0x56f   :  { %v5560_v54 = vpop.eup %4690  ;;  %v2787_v18 = vmul.f32 1.442695, %v2760_v25  ;;  %v2785_v23 = vmul.f32 1.442695, %v2759_v15 }
 0x570   :  { %v5562_v27 = vpop.eup %4692  ;;  %4146 = vmatprep.mubr.msk.f32.mxu0 %vm1105_vm3, %v5560_v54  ;;  %v2730_v57 = vpop.xlane.xlu1 %2729 }
 0x571   :  { %v2727_v32 = vpop.xlane.xlu0 %2726  ;;  %4702 = vpow2.f32 %v2787_v18  ;;  %v2758_v14 = vsub.f32 %v5491_v16, %v2730_v57  ;;  %4147 = vmatmul.mubr.msk.f32.vlgmr.msra.gmra.mrb[26].mxu0 %vm1105_vm3, %v5562_v27 }
 0x572   :  { %v2757_v10 = vsub.f32 %v5493_v17, %v2727_v32  ;;  %v4695_v63 = vpop.eup %4694  ;;  %4704 = vpow2.f32 %v2785_v23  ;;  %4375 = vmatpush3.bf16.msra.mxu0 %v5414_v41 }
 0x573   :  { %v4697_v35 = vpop.eup %4696  ;;  %v2783_v31 = vmul.f32 1.442695, %v2758_v14  ;;  %4381 = vmatprep.subr.bf16.mxu0 %v4380_v13  ;;  %4167 = vmatprep.mubr.msk.f32.mxu1 %vm1105_vm3, %v4695_v63 }
 0x574   :  { %v2781_v26 = vmul.f32 1.442695, %v2757_v10  ;;  %4168 = vmatmul.mubr.msk.f32.vlgmr.msra.gmra.mrb[32].mxu1 %vm1105_vm3, %v4697_v35  ;;  %v2748_v49 = vpop.xlane.xlu1 %2747  ;;  %v2818_v16 = vsel %vm1105_vm3, %v4697_v35, 0.0  ;;  %v2797_v10 = vsel %vm1105_vm3, %v5560_v54, 0.0  ;;  %v1205_v35 = vsel %vm1105_vm3, %v5208_v1, 0.0 }
 0x575   :  { %v2745_v0 = vpop.xlane.xlu0 %2744  ;;  %4706 = vpow2.f32 %v2783_v31  ;;  %4387 = vmatpush3.bf16.msra.mxu1 %v4384_v4  ;;  %v2764_v17 = vsub.f32 %v5483_v9, %v2748_v49  ;;  %2819 = vadd.xlane.f32.xlu0 %v2818_v16  ;;  %v2815_v9 = vsel %vm1105_vm3, %v4695_v63, 0.0  ;;  %v2800_v31 = vsel %vm1105_vm3, %v5562_v27, 0.0 }
 0x576   :  { %v2763_v38 = vsub.f32 %v5485_v59, %v2745_v0  ;;  %4708 = vpow2.f32 %v2781_v26 }
 0x577   :  { %v4699_v41 = vpop.eup %4698  ;;  %v2795_v50 = vmul.f32 1.442695, %v2764_v17 }
 0x578   :  { %v2793_v56 = vmul.f32 1.442695, %v2763_v38  ;;  %v4701_v3 = vpop.eup %4700  ;;  %v2742_v55 = vpop.xlane.xlu1 %2741  ;;  %v2812_v6 = vsel %vm1105_vm3, %v4699_v41, 0.0 }
 0x579   :  { %v2739_v8 = vpop.xlane.xlu0 %2738  ;;  %4710 = vpow2.f32 %v2795_v50  ;;  %4160 = vmatprep.mubr.msk.f32.mxu0 %vm1105_vm3, %v4701_v3  ;;  %v2762_v11 = vsub.f32 %v5503_v33, %v2742_v55  ;;  %2813 = vadd.xlane.f32.xlu1 %v2812_v6  ;;  %v2809_v61 = vsel %vm1105_vm3, %v4701_v3, 0.0 }
 0x57a   :  { %v2761_v4 = vsub.f32 %v5505_v53, %v2739_v8  ;;  %4712 = vpow2.f32 %v2793_v56  ;;  %4161 = vmatmul.mubr.msk.f32.vlgmr.msra.gmra.mrb[28].mxu0 %vm1105_vm3, %v4699_v41  ;;  %2816 = vadd.xlane.f32.xlu0 %v2815_v9 }
 0x57b   :  { %v4703_v59 = vpop.eup %4702  ;;  %v2791_v12 = vmul.f32 1.442695, %v2762_v11  ;;  %4383 = vmatpush3.bf16.msra.mxu0 %v4380_v13 }
 0x57c   :  { %v2789_v51 = vmul.f32 1.442695, %v2761_v4  ;;  %v4705_v37 = vpop.eup %4704  ;;  %v4651_v60 = vpop.permute.xlu1 %4650  ;;  %v2830_v25 = vsel %vm1105_vm3, %v4703_v59, 0.0 }
 0x57d   :  { %v4646_v40 = vpop.permute.xlu0 %4645  ;;  %4714 = vpow2.f32 %v2791_v12  ;;  %4181 = vmatprep.mubr.msk.f32.mxu1 %vm1105_vm3, %v4705_v37  ;;  %v4653_v33 = vunpack.i.h.bf16 %v4651_v60  ;;  %v4652_v53 = vunpack.i.l.bf16 %v4651_v60  ;;  %v2827_v52 = vsel %vm1105_vm3, %v4705_v37, 0.0 }
 0x57e   :  { %v4648_v2 = vunpack.i.h.bf16 %v4646_v40  ;;  %4716 = vpow2.f32 %v2789_v51  ;;  %v4647_v28 = vunpack.i.l.bf16 %v4646_v40  ;;  %4182 = vmatmul.mubr.msk.f32.vlgmr.msra.gmra.mrb[34].mxu1 %vm1105_vm3, %v4703_v59  ;;  %2810 = vadd.xlane.f32.xlu0 %v2809_v61 }
 0x57f   :  { %v4707_v58 = vpop.eup %4706  ;;  %v4392_v5 = vpack.c.bf16 %v4653_v33, %v4652_v53  ;;  %2828 = vadd.xlane.f32.xlu1 %v2827_v52  ;;  %v3595_v52 = vld [vmem:[#allocation7] sm:$0xff] }
 0x580   :  { %v4709_v30 = vpop.eup %4708  ;;  %v4388_v39 = vpack.c.bf16 %v4648_v2, %v4647_v28  ;;  %v2824_v23 = vsel %vm1105_vm3, %v4707_v58, 0.0 }
 0x581   :  { %4174 = vmatprep.mubr.msk.f32.mxu0 %vm1105_vm3, %v4709_v30  ;;  %v2821_v21 = vsel %vm1105_vm3, %v4709_v30, 0.0  ;;  %4393 = vmatprep.subr.bf16.mxu1 %v4392_v5 }
 0x582   :  { %4175 = vmatmul.mubr.msk.f32.vlgmr.msra.gmra.mrb[30].mxu0 %vm1105_vm3, %v4707_v58  ;;  %2831 = vadd.xlane.f32.xlu0 %v2830_v25  ;;  %v3596_v58 = vld [vmem:[#allocation7 + $0x8] sm:$0xff] }
 0x583   :  { %v4711_v15 = vpop.eup %4710  ;;  %2822 = vadd.xlane.f32.xlu1 %v2821_v21  ;;  %4389 = vmatprep.subr.bf16.mxu0 %v4388_v39  ;;  %v4396_v30 = vpack.c.bf16 %v3596_v58, %v3595_v52  ;;  %v3598_v21 = vld [vmem:[#allocation7 + $0x18] sm:$0xff] }
 0x584   :  { %v4713_v18 = vpop.eup %4712  ;;  %4391 = vmatpush3.bf16.msra.mxu0 %v4388_v39  ;;  %4395 = vmatpush3.bf16.msra.mxu1 %v4392_v5  ;;  %v2842_v14 = vsel %vm1105_vm3, %v4711_v15, 0.0 }
 0x585   :  { %4195 = vmatprep.mubr.msk.f32.mxu1 %vm1105_vm3, %v4713_v18  ;;  %v2839_v57 = vsel %vm1105_vm3, %v4713_v18, 0.0  ;;  %4397 = vmatprep.subr.bf16.mxu0 %v4396_v30  ;;  %v3599_v18 = vld [vmem:[#allocation7 + $0x20] sm:$0xff] }
 0x586   :  { %2825 = vadd.xlane.f32.xlu0 %v2824_v23  ;;  %v3600_v23 = vld [vmem:[#allocation7 + $0x28] sm:$0xff] }
 0x587   :  { %v4715_v32 = vpop.eup %4714  ;;  %4196 = vmatmul.mubr.msk.f32.vlgmr.msra.gmra.mrb[36].mxu1 %vm1105_vm3, %v4711_v15  ;;  %2840 = vadd.xlane.f32.xlu1 %v2839_v57  ;;  %v4404_v57 = vpack.c.bf16 %v3600_v23, %v3599_v18 }
 0x588   :  { %v5594_v13 = vpop.eup %4716  ;;  %v2836_v63 = vsel %vm1105_vm3, %v4715_v32, 0.0 }
 0x589   :  { %4188 = vmatprep.mubr.msk.f32.mxu0 %vm1105_vm3, %v5594_v13  ;;  %v2833_v60 = vsel %vm1105_vm3, %v5594_v13, 0.0  ;;  %v3601_v13 = vld [vmem:[#allocation7 + $0x30] sm:$0xff] }
 0x58a   :  { %2843 = vadd.xlane.f32.xlu0 %v2842_v14  ;;  %4189 = vmatmul.mubr.msk.f32.vlgmr.msra.gmra.mrb[32].mxu0 %vm1105_vm3, %v4715_v32  ;;  %v3602_v14 = vld [vmem:[#allocation7 + $0x38] sm:$0xff] }
 0x58b   :  { %2798 = vadd.xlane.f32.xlu1 %v2797_v10  ;;  %4399 = vmatpush3.bf16.msra.mxu0 %v4396_v30 }
 0x58e   :  { %2837 = vadd.xlane.f32.xlu0 %v2836_v63  ;;  %v4408_v63 = vpack.c.bf16 %v3602_v14, %v3601_v13 }
 0x592   :  { %1206 = vadd.xlane.f32.xlu0 %v1205_v35 }
 0x596   :  { %2801 = vadd.xlane.f32.xlu0 %v2800_v31 }
 0x5ad   :  { %v1213_v26 = vpop.xlane.xlu1 %1212  ;;  %v1210_v49 = vpop.xlane.xlu0 %1209 }
 0x5ae   :  { %4718 = vrcp.f32 %v1213_v26 }
 0x5af   :  { %4720 = vrcp.f32 %v1210_v49 }
 0x5b1   :  { %v1222_v0 = vpop.xlane.xlu1 %1221  ;;  %v1216_v51 = vpop.xlane.xlu0 %1215 }
 0x5b2   :  { %4722 = vrcp.f32 %v1222_v0 }
 0x5b5   :  { %v1228_v54 = vpop.xlane.xlu1 %1227 }
 0x5b6   :  { %4724 = vrcp.f32 %v1228_v54 }
 0x5b8   :  { %v4719_v16 = vpop.eup %4718 }
 0x5b9   :  { %v4721_v17 = vpop.eup %4720  ;;  %v1234_v38 = vpop.xlane.xlu1 %1233  ;;  %v1917_v41 = vmul.f32 %v4719_v16, %v5419_v62 }
 0x5ba   :  { %4726 = vrcp.f32 %v1234_v38  ;;  %v1916_v1 = vmul.f32 %v4721_v17, %v5421_v42 }
 0x5bb   :  { %1934 = vrot.lane.b32.xlu0 %v1917_v41, %s4881_s17 }
 0x5bc   :  { %v4723_v27 = vpop.eup %4722  ;;  %1932 = vrot.lane.b32.xlu1 %v1916_v1, %s4881_s17 }
 0x5bd   :  { %v1237_v50 = vpop.xlane.xlu1 %1236  ;;  %v1920_v56 = vmul.f32 %v4723_v27, %v5429_v46 }
 0x5be   :  { %4728 = vrcp.f32 %v1237_v50 }
 0x5bf   :  { %1948 = vrot.lane.b32.xlu0 %v1920_v56, %s4892_s15 }
 0x5c0   :  { %v4725_v3 = vpop.eup %4724 }
 0x5c1   :  { %v1243_v55 = vpop.xlane.xlu1 %1242  ;;  %v1922_v8 = vmul.f32 %v4725_v3, %v5433_v29 }
 0x5c2   :  { %4730 = vrcp.f32 %v1243_v55 }
 0x5c3   :  { %1956 = vrot.lane.b32.xlu0 %v1922_v8, %s4893_s16 }
 0x5c4   :  { %v4727_v62 = vpop.eup %4726 }
 0x5c5   :  { %v1249_v42 = vpop.xlane.xlu1 %1248  ;;  %v1924_v6 = vmul.f32 %v4727_v62, %v5437_v7 }
 0x5c6   :  { %4732 = vrcp.f32 %v1249_v42 }
 0x5c7   :  { %1964 = vrot.lane.b32.xlu0 %v1924_v6, %s4894_s18 }
 0x5c8   :  { %v4729_v46 = vpop.eup %4728 }
 0x5c9   :  { %v1204_v11 = vpop.xlane.xlu1 %1203  ;;  %v1925_v4 = vmul.f32 %v4729_v46, %v5435_v36  ;;  %v1219_v36 = vpop.xlane.xlu0 %1218 }
 0x5ca   :  { %4734 = vrcp.f32 %v1204_v11 }
 0x5cb   :  { %1966 = vrot.lane.b32.xlu0 %v1925_v4, %s4894_s18  ;;  %4736 = vrcp.f32 %v1216_v51 }
 0x5cc   :  { %v4731_v29 = vpop.eup %4730  ;;  %4738 = vrcp.f32 %v1219_v36 }
 0x5cd   :  { %v1927_v9 = vmul.f32 %v4731_v29, %v5451_v22  ;;  %v1225_v22 = vpop.xlane.xlu0 %1224 }
 0x5ce   :  { %4740 = vrcp.f32 %v1225_v22 }
 0x5cf   :  { %1974 = vrot.lane.b32.xlu0 %v1927_v9, %s4895_s19 }
 0x5d0   :  { %v4733_v59 = vpop.eup %4732 }
 0x5d1   :  { %v1929_v7 = vmul.f32 %v4733_v59, %v5439_v48  ;;  %v1231_v40 = vpop.xlane.xlu0 %1230 }
 0x5d2   :  { %4742 = vrcp.f32 %v1231_v40 }
 0x5d3   :  { %1982 = vrot.lane.b32.xlu0 %v1929_v7, %s4896_s20 }
 0x5d4   :  { %v4735_v12 = vpop.eup %4734 }
 0x5d5   :  { %v5624_v37 = vmul.f32 %v4735_v12, %v5379_v34  ;;  %v4737_v61 = vpop.eup %4736  ;;  %v1240_v48 = vpop.xlane.xlu0 %1239 }
 0x5d6   :  { %v1918_v33 = vmul.f32 %v4737_v61, %v5425_v44  ;;  %v4739_v53 = vpop.eup %4738  ;;  %4744 = vrcp.f32 %v1240_v48  ;;  %v3597_v44 = vld [vmem:[#allocation7 + $0x10] sm:$0xff] }
 0x5d7   :  { %v1919_v2 = vmul.f32 %v4739_v53, %v5423_v43  ;;  %v4400_v15 = vpack.c.bf16 %v3598_v21, %v3597_v44 }
 0x5d8   :  { %v4741_v28 = vpop.eup %4740 }
 0x5d9   :  { %v1246_v34 = vpop.xlane.xlu0 %1245  ;;  %v1921_v5 = vmul.f32 %v4741_v28, %v5427_v45  ;;  %4401 = vmatprep.subr.bf16.mxu0 %v4400_v15 }
 0x5da   :  { %4746 = vrcp.f32 %v1246_v34  ;;  %4403 = vmatpush3.bf16.msra.mxu0 %v4400_v15 }
 0x5db   :  { %4405 = vmatprep.subr.bf16.mxu0 %v4404_v57 }
 0x5dc   :  { %v4743_v39 = vpop.eup %4742 }
 0x5dd   :  { %v1923_v25 = vmul.f32 %v4743_v39, %v5431_v19 }
 0x5de   :  { %4407 = vmatpush3.bf16.msra.mxu0 %v4404_v57 }
 0x5df   :  { %4409 = vmatprep.subr.bf16.mxu0 %v4408_v63 }
 0x5e0   :  { %2834 = vadd.xlane.f32.xlu1 %v2833_v60  ;;  %v4745_v43 = vpop.eup %4744 }
 0x5e1   :  { %v1926_v45 = vmul.f32 %v4745_v43, %v5455_v47 }
 0x5e2   :  { %4411 = vmatpush3.bf16.msra.mxu0 %v4408_v63 }
 0x5e4   :  { %v4747_v32 = vpop.eup %4746 }
 0x5e5   :  { %v1928_v19 = vmul.f32 %v4747_v32, %v5441_v20 }
 0x5e9   :  { %v2808_v49 = vpop.xlane.xlu1 %2807 }
 0x5ea   :  { %v2805_v10 = vpop.xlane.xlu0 %2804  ;;  %4748 = vrcp.f32 %v2808_v49 }
 0x5eb   :  { %4750 = vrcp.f32 %v2805_v10 }
 0x5f1   :  { %1940 = vrot.lane.b32.xlu1 %v1918_v33, %s4878_s29 }
 0x5f4   :  { %v4749_v1 = vpop.eup %4748 }
 0x5f5   :  { %1942 = vrot.lane.b32.xlu1 %v1919_v2, %s4878_s29  ;;  %v4751_v27 = vpop.eup %4750 }
 0x5f9   :  { %1950 = vrot.lane.b32.xlu1 %v1921_v5, %s4892_s15 }
 0x5fd   :  { %1958 = vrot.lane.b32.xlu1 %v1923_v25, %s4893_s16 }
 0x601   :  { %1972 = vrot.lane.b32.xlu1 %v1926_v45, %s4895_s19 }
 0x602   :  { %v2820_v35 = vpop.xlane.xlu0 %2819 }
 0x605   :  { %1980 = vrot.lane.b32.xlu1 %v1928_v19, %s4896_s20 }
 0x606   :  { %v2814_v54 = vpop.xlane.xlu1 %2813 }
 0x607   :  { %v2817_v31 = vpop.xlane.xlu0 %2816 }
 0x60b   :  { %v2811_v26 = vpop.xlane.xlu0 %2810 }
 0x60c   :  { %v2829_v17 = vpop.xlane.xlu1 %2828 }
 0x60f   :  { %v2832_v47 = vpop.xlane.xlu0 %2831 }
 0x610   :  { %v2823_v41 = vpop.xlane.xlu1 %2822 }
 0x613   :  { %v2826_v0 = vpop.xlane.xlu0 %2825 }
 0x614   :  { %v5642_v55 = vpop.xlane.xlu1 %2840 }
 0x617   :  { %v2844_v16 = vpop.xlane.xlu0 %2843 }
 0x618   :  { %v2799_v42 = vpop.xlane.xlu1 %2798 }
 0x61b   :  { %v2838_v38 = vpop.xlane.xlu0 %2837 }
 0x61f   :  { %v5640_v50 = vpop.xlane.xlu0 %1206 }
 0x623   :  { %v2802_v62 = vpop.xlane.xlu0 %2801 }
 0x624   :  { %4752 = vrcp.f32 %v2802_v62 }
 0x625   :  { %4754 = vrcp.f32 %v2799_v42 }
 0x626   :  { %4756 = vrcp.f32 %v2820_v35 }
 0x627   :  { %4758 = vrcp.f32 %v2817_v31 }
 0x628   :  { %4760 = vrcp.f32 %v2814_v54 }
 0x629   :  { %4762 = vrcp.f32 %v2811_v26 }
 0x62a   :  { %4764 = vrcp.f32 %v2829_v17 }
 0x62b   :  { %4766 = vrcp.f32 %v2832_v47 }
 0x62c   :  { %4768 = vrcp.f32 %v2823_v41 }
 0x62d   :  { %4770 = vrcp.f32 %v2826_v0  ;;  %v1935_v14 = vpop.permute.xlu0 %1934 }
 0x62e   :  { %v4753_v6 = vpop.eup %4752  ;;  %4772 = vrcp.f32 %v2838_v38  ;;  %v1933_v63 = vpop.permute.xlu1 %1932 }
 0x62f   :  { %v4755_v11 = vpop.eup %4754  ;;  %4774 = vrcp.f32 %v2844_v16  ;;  %v1986_v41 = vsel %vm412_vm1, %v5624_v37, %v1933_v63 }
 0x630   :  { %v4155_v20 = vpop.f32.mrb[30].mxu1  ;;  %v4757_v59 = vpop.eup %4756  ;;  %4776 = vrcp.f32 %v5640_v50 }
 0x631   :  { %v3512_v56 = vmul.f32 %v4749_v1, %v4155_v20  ;;  %v2998_v3 = vpop.f32.mrb[31].mxu1  ;;  %v4759_v36 = vpop.eup %4758 }
 0x632   :  { %v3511_v8 = vmul.f32 %v4751_v27, %v2998_v3  ;;  %v4761_v22 = vpop.eup %4760  ;;  %v1949_v19 = vpop.permute.xlu0 %1948 }
 0x633   :  { %3529 = vrot.lane.b32.xlu0 %v3512_v56, %s4881_s17  ;;  %v4763_v33 = vpop.eup %4762 }
 0x634   :  { %3527 = vrot.lane.b32.xlu1 %v3511_v8, %s4881_s17  ;;  %v4765_v2 = vpop.eup %4764 }
 0x635   :  { %v4767_v52 = vpop.eup %4766 }
 0x636   :  { %v4769_v39 = vpop.eup %4768  ;;  %v1957_v31 = vpop.permute.xlu0 %1956 }
 0x637   :  { %v4771_v21 = vpop.eup %4770 }
 0x638   :  { %v4773_v23 = vpop.eup %4772 }
 0x639   :  { %v4775_v13 = vpop.eup %4774 }
 0x63a   :  { %v1965_v47 = vpop.permute.xlu0 %1964  ;;  %v4777_v0 = vpop.eup %4776 }
 0x63b   :  { %v1915_v16 = vmul.f32 %v4777_v0, %v5370_v24 }
 0x63d   :  { %v1987_v20 = vsel %vm412_vm1, %v1915_v16, %v1935_v14  ;;  %v3829_v14 = vld [vmem:[%s5726_s4] ss:$0 sm:$0xff]  ;;  %s4848_s4 = scalar_lea.vmem %s3717_s23, 512 }
 0x63e   :  { %v1967_v1 = vpop.permute.xlu0 %1966  ;;  %p4849_p10 = scmp.ne.s32.totalorder %s3717_s23, %s4848_s4  ;;  %p4854_p12 = scmp.lt.s32.totalorder %s4848_s4, %s4848_s4 }
 0x640   :  { %p4855_p13 = por %p4854_p12, %p4853_p11 }
 0x642   :  { %v1975_v62 = vpop.permute.xlu0 %1974  ;;  %p4856_p0 = pnand %p4855_p13, %p4849_p10 }
 0x644   :  { %v4148_v46 = vpop.f32.mrb[26].mxu0 }
 0x645   :  { %v5646_v4 = vmul.f32 %v4753_v6, %v4148_v46  ;;  %v2917_v29 = vpop.f32.mrb[27].mxu0 }
 0x646   :  { %v5648_v9 = vmul.f32 %v4755_v11, %v2917_v29 }
 0x647   :  { %v4169_v7 = vpop.f32.mrb[32].mxu1 }
 0x648   :  { %v3516_v12 = vmul.f32 %v4757_v59, %v4169_v7  ;;  %v3160_v51 = vpop.f32.mrb[33].mxu1 }
 0x649   :  { %v3515_v60 = vmul.f32 %v4759_v36, %v3160_v51 }
 0x64a   :  { %3545 = vrot.lane.b32.xlu1 %v3516_v12, %s4892_s15  ;;  %v1983_v12 = vpop.permute.xlu0 %1982 }
 0x64d   :  { %v4162_v40 = vpop.f32.mrb[28].mxu0 }
 0x64e   :  { %v3514_v61 = vmul.f32 %v4761_v22, %v4162_v40  ;;  %v3079_v48 = vpop.f32.mrb[29].mxu0  ;;  %3543 = vrot.lane.b32.xlu1 %v3515_v60, %s4892_s15 }
 0x64f   :  { %v3513_v53 = vmul.f32 %v4763_v33, %v3079_v48 }
 0x650   :  { %3537 = vrot.lane.b32.xlu0 %v3514_v61, %s4878_s29 }
 0x651   :  { %v4183_v34 = vpop.f32.mrb[34].mxu1 }
 0x652   :  { %v3322_v28 = vpop.f32.mrb[35].mxu1  ;;  %3535 = vrot.lane.b32.xlu1 %v3513_v53, %s4878_s29  ;;  %v3520_v5 = vmul.f32 %v4767_v52, %v4183_v34 }
 0x653   :  { %v3519_v58 = vmul.f32 %v4765_v2, %v3322_v28 }
 0x655   :  { %v4176_v30 = vpop.f32.mrb[30].mxu0  ;;  %3559 = vrot.lane.b32.xlu0 %v3519_v58, %s4894_s18 }
 0x656   :  { %v3241_v44 = vpop.f32.mrb[31].mxu0  ;;  %3561 = vrot.lane.b32.xlu1 %v3520_v5, %s4894_s18  ;;  %v3518_v15 = vmul.f32 %v4771_v21, %v4176_v30 }
 0x657   :  { %v3517_v25 = vmul.f32 %v4769_v39, %v3241_v44 }
 0x659   :  { %3551 = vrot.lane.b32.xlu0 %v3517_v25, %s4893_s16 }
 0x65a   :  { %v4197_v43 = vpop.f32.mrb[36].mxu1  ;;  %3553 = vrot.lane.b32.xlu1 %v3518_v15, %s4893_s16 }
 0x65b   :  { %v3484_v18 = vpop.f32.mrb[37].mxu1  ;;  %v3524_v10 = vmul.f32 %v4775_v13, %v4197_v43 }
 0x65d   :  { %v4190_v45 = vpop.f32.mrb[32].mxu0 }
 0x65e   :  { %v3522_v57 = vmul.f32 %v4773_v23, %v4190_v45  ;;  %v3403_v32 = vpop.f32.mrb[33].mxu0 }
 0x660   :  { %3569 = vrot.lane.b32.xlu1 %v3522_v57, %s4895_s19 }
 0x664   :  { %3577 = vrot.lane.b32.xlu1 %v3524_v10, %s4896_s20 }
 0x66d   :  { %v2835_v35 = vpop.xlane.xlu1 %2834 }
 0x66e   :  { %4778 = vrcp.f32 %v2835_v35 }
 0x66f   :  { %4780 = vrcp.f32 %v5642_v55 }
 0x671   :  { %v1941_v26 = vpop.permute.xlu1 %1940 }
 0x672   :  { %v1988_v27 = vsel %vm1105_vm3, %v1986_v41, %v1941_v26 }
 0x673   :  { %v1991_v8 = vsel %vm1990_vm4, %v1988_v27, %v1949_v19 }
 0x674   :  { %v1994_v46 = vsel %vm1993_vm5, %v1991_v8, %v1957_v31 }
 0x675   :  { %v1943_v49 = vpop.permute.xlu1 %1942  ;;  %v1997_v11 = vsel %vm1996_vm6, %v1994_v46, %v1965_v47 }
 0x676   :  { %v1989_v56 = vsel %vm1105_vm3, %v1987_v20, %v1943_v49 }
 0x678   :  { %v4779_v54 = vpop.eup %4778 }
 0x679   :  { %v1951_v17 = vpop.permute.xlu1 %1950  ;;  %v3521_v38 = vmul.f32 %v4779_v54, %v3403_v32  ;;  %v4781_v50 = vpop.eup %4780 }
 0x67a   :  { %v3523_v3 = vmul.f32 %v4781_v50, %v3484_v18  ;;  %v1992_v55 = vsel %vm1990_vm4, %v1989_v56, %v1951_v17 }
 0x67b   :  { %3567 = vrot.lane.b32.xlu0 %v3521_v38, %s4895_s19 }
 0x67d   :  { %v1959_v24 = vpop.permute.xlu1 %1958 }
 0x67e   :  { %v1995_v37 = vsel %vm1993_vm5, %v1992_v55, %v1959_v24 }
 0x67f   :  { %3575 = vrot.lane.b32.xlu0 %v3523_v3, %s4896_s20  ;;  %v1998_v42 = vsel %vm1996_vm6, %v1995_v37, %v1967_v1 }
 0x680   :  { %v2001_v29 = vsel %vm1999_vm7, %v1998_v42, %v1975_v62 }
 0x681   :  { %v1973_v6 = vpop.permute.xlu1 %1972  ;;  %v2004_v36 = vsel %vm2002_vm8, %v2001_v29, %v1983_v12 }
 0x682   :  { %v2000_v59 = vsel %vm1999_vm7, %v1997_v11, %v1973_v6 }
 0x685   :  { %v1981_v7 = vpop.permute.xlu1 %1980 }
 0x686   :  { %v2003_v51 = vsel %vm2002_vm8, %v2000_v59, %v1981_v7 }
 0x687   :  { %4214 = vmatprep.mubr.msk.f32.mxu0 %vm94_vm0, %v2003_v51 }
 0x688   :  { %4215 = vmatmul.mubr.msk.f32.vlgmr.msra.gmra.mrb[34].mxu0 %vm94_vm0, %v2004_v36 }
 0x6a5   :  { %v3530_v48 = vpop.permute.xlu0 %3529 }
 0x6a6   :  { %v3528_v60 = vpop.permute.xlu1 %3527  ;;  %v3582_v52 = vsel %vm412_vm1, %v5646_v4, %v3530_v48 }
 0x6a7   :  { %v3581_v28 = vsel %vm412_vm1, %v5648_v9, %v3528_v60 }
 0x6bc   :  { %v3546_v22 = vpop.permute.xlu1 %3545 }
 0x6c0   :  { %v3544_v40 = vpop.permute.xlu1 %3543 }
 0x6c2   :  { %v3538_v33 = vpop.permute.xlu0 %3537 }
 0x6c3   :  { %v3584_v30 = vsel %vm1105_vm3, %v3582_v52, %v3538_v33 }
 0x6c4   :  { %v3536_v61 = vpop.permute.xlu1 %3535  ;;  %v3586_v25 = vsel %vm1990_vm4, %v3584_v30, %v3546_v22 }
 0x6c5   :  { %v3583_v58 = vsel %vm1105_vm3, %v3581_v28, %v3536_v61 }
 0x6c6   :  { %v3585_v44 = vsel %vm1990_vm4, %v3583_v58, %v3544_v40 }
 0x6c7   :  { %v3560_v34 = vpop.permute.xlu0 %3559 }
 0x6c8   :  { %v3562_v53 = vpop.permute.xlu1 %3561 }
 0x6cb   :  { %v3552_v5 = vpop.permute.xlu0 %3551 }
 0x6cc   :  { %v3554_v2 = vpop.permute.xlu1 %3553  ;;  %v3587_v21 = vsel %vm1993_vm5, %v3585_v44, %v3552_v5 }
 0x6cd   :  { %v3588_v43 = vsel %vm1993_vm5, %v3586_v25, %v3554_v2  ;;  %v3589_v9 = vsel %vm1996_vm6, %v3587_v21, %v3560_v34 }
 0x6ce   :  { %v3590_v4 = vsel %vm1996_vm6, %v3588_v43, %v3562_v53 }
 0x6d2   :  { %v3570_v39 = vpop.permute.xlu1 %3569 }
 0x6d3   :  { %v3592_v57 = vsel %vm1999_vm7, %v3590_v4, %v3570_v39 }
 0x6d6   :  { %v3578_v18 = vpop.permute.xlu1 %3577 }
 0x6d7   :  { %v3594_v13 = vsel %vm2002_vm8, %v3592_v57, %v3578_v18 }
 0x6ed   :  { %v3568_v15 = vpop.permute.xlu0 %3567 }
 0x6ee   :  { %v3591_v23 = vsel %vm1999_vm7, %v3589_v9, %v3568_v15 }
 0x6f1   :  { %v3576_v45 = vpop.permute.xlu0 %3575 }
 0x6f2   :  { %v3593_v32 = vsel %vm2002_vm8, %v3591_v23, %v3576_v45 }
 0x6f3   :  { %4217 = vmatprep.mubr.msk.f32.mxu0 %vm94_vm0, %v3593_v32 }
 0x6f4   :  { %4218 = vmatmul.mubr.msk.f32.gmra.mrb[36].mxu0 %vm94_vm0, %v3594_v13 }
 0x75b   :  { %v4216_v10 = vpop.f32.mrb[34].mxu0 }
 0x75c   :  { %v3694_v19 = vadd.f32 %v4216_v10, %v3829_v14  ;;  %v3688_v63 = vpop.f32.mrb[35].mxu0 }
 0x75d   :  { %v3689_v35 = vadd.f32 %v3829_v14, %v3688_v63 }
 0x75e   :  { %3708 = vst.msk [vmem:[#allocation8 + $0x8] sm:$0xff] %vm94_vm0, %v3694_v19 }
 0x75f   :  { %3707 = vst.msk [vmem:[#allocation8] sm:$0xff] %vm94_vm0, %v3689_v35 }
 0x7c7   :  { %v4219_v31 = vpop.f32.mrb[36].mxu0 }
 0x7c8   :  { %v3704_v26 = vadd.f32 %v4219_v31, %v3829_v14  ;;  %v3698_v47 = vpop.f32.mrb[37].mxu0 }
 0x7c9   :  { %v3699_v49 = vadd.f32 %v3829_v14, %v3698_v47 }
 0x7ca   :  { %3710 = vst.msk [vmem:[#allocation8 + $0x18] sm:$0xff] %vm94_vm0, %v3704_v26 }
 0x7cb   :  { %3709 = vst.msk [vmem:[#allocation8 + $0x10] sm:$0xff] %vm94_vm0, %v3699_v49 }
 0x7cc   :  { %4859 = shalt.err (!%p4856_p0)
}
 0x7cd   :  { %s4860_s26 = scalar_lea.hbm %s5727_s5, 512 }
 0x7ce   :  { %p4861_p1 = scmp.ne.s32.totalorder %s5727_s5, %s4860_s26  ;;  %p4864_p2 = scmp.lt.u32.totalorder %s4860_s26, %s5727_s5 }
 0x7d0   :  { %p4866_p3 = pnand %p4864_p2, %p4861_p1 }
 0x7d2   :  { %4869 = shalt.err (!%p4866_p3)
}
 0x7d3   :  { %3722 = dma.vmem_to_hbm [thread:$0]  %s3717_s23, 512, %s5727_s5, [#allocation4], %s4880_s1, %s4880_s1, %s4881_s17  }
 0x7d4   :  { %4874 = dma.done.wait [#allocation4], 512  }
 0x7d5   :  { %4875 = vsyncadd [#allocation4], 4294966784 }
 0x7d6   :  { %3726 = vsyncpa [#allocation3], 1 }
 0x7d7   :  { %3727 = vsyncpa [#allocation6], 1 }
 0x7d8   :  { %3728 = vsyncpa [#allocation4], 1 }

</bundles_post_ra>
